<compile_context>
chip_gen: v7x
topology: tpu7x:2x2x1
jax: 0.10.0
libtpu: 0.0.40
codegen_flags: <defaults>
</compile_context>

<pallas_src>
import jax
import jax.numpy as jnp
from jax.experimental import pallas as pl
from jax.experimental.pallas import tpu as pltpu


def _decoder_tile_kernel(x_ref, uh_ref, cw3_ref, w9_ref, bias_ref, o_ref):
    # x_ref:    (1, Cin*H, W)     bf16  input activations, NCHW rows flattened (ci, h)
    # uh_ref:   (1, TH+2, H)      bf16  row-interp rows for this tile (halo + zero-pad rows)
    # cw3_ref:  (W, 3*Wo)         bf16  col-interp (+zero-pad cols) for kx = 0, 1, 2
    # w9_ref:   (9, Cout, Cin)    bf16  conv weights * BN scale, tap order k = ky*3 + kx
    # bias_ref: (Cout, 1)         f32   folded conv bias + BN shift
    # o_ref:    (1, Cout, TH*Wo)  f32
    thp, h = uh_ref.shape[1], uh_ref.shape[2]
    th = thp - 2
    wo = cw3_ref.shape[1] // 3
    cout, cin = w9_ref.shape[1], w9_ref.shape[2]

    # 1) Column interpolation + conv column zero-padding + the three kx taps as ONE
    #    bf16 2-D MXU matmul: q[(ci,h), kx*Wo + x] = (x[ci] @ uw_pad^T)[h, x + kx].
    q = jnp.dot(x_ref[0], cw3_ref[...], preferred_element_type=jnp.float32)
    q = q.astype(jnp.bfloat16).reshape(cin, h, 3 * wo)          # (Cin, H, 3*Wo)

    # 2) Row interpolation + conv row zero-padding for this tile's halo'd rows.
    #    Kept Cin-batched on purpose (see header comment): channels must stay on the
    #    sublane-major side for the tap matmuls in step 3.
    uh = jnp.broadcast_to(uh_ref[0][None], (cin, thp, h))
    p = jax.lax.dot_general(uh, q, (((2,), (1,)), ((0,), (0,))),
                            preferred_element_type=jnp.float32)  # (Cin, TH+2, 3*Wo)
    p = p.astype(jnp.bfloat16)

    # 3) 3x3 conv as 9 accumulating tap matmuls (BN scale already folded into w9).
    #    kx taps are lane-contiguous chunks of p; ky taps are sublane row windows.
    acc = jnp.zeros((cout, th * wo), jnp.float32)
    for ky in range(3):
        for kx in range(3):
            tap = p[:, ky:ky + th, kx * wo:(kx + 1) * wo].reshape(cin, th * wo)
            acc = acc + jnp.dot(w9_ref[ky * 3 + kx], tap,
                                preferred_element_type=jnp.float32)

    # Folded conv bias + BN shift, ReLU; lane-dense (Cout, TH*Wo) store.
    o_ref[0] = jnp.maximum(acc + bias_ref[...], 0.0)


def _upsample_pad_matrix(n_in):
    # (2*n_in + 2, n_in): rows 1..2*n_in implement bilinear x2 upsampling with
    # align_corners=True (nn.Upsample semantics); rows 0 / -1 are zero (conv padding=1).
    n_out = 2 * n_in
    if n_in == 1:
        body = jnp.ones((n_out, 1), jnp.float32)
    else:
        src = jnp.arange(n_out, dtype=jnp.float32) * (n_in - 1) / (n_out - 1)
        i0 = jnp.clip(jnp.floor(src).astype(jnp.int32), 0, n_in - 2)
        frac = src - i0.astype(jnp.float32)
        body = ((1.0 - frac)[:, None] * jax.nn.one_hot(i0, n_in, dtype=jnp.float32)
                + frac[:, None] * jax.nn.one_hot(i0 + 1, n_in, dtype=jnp.float32))
    return jnp.pad(body, ((1, 1), (0, 0)))


def _pick_row_block(Ho, Wo):
    # Divisor of Ho, multiple of 8, with th*Wo a multiple of 128 (lane-dense stores).
    cands = [t for t in range(8, Ho + 1, 8)
             if Ho % t == 0 and (t * Wo) % 128 == 0]
    if not cands:
        return Ho
    small = [t for t in cands if t <= 64]
    return max(small) if small else min(cands)


def decoder_forward(x_nchw, w, b, gamma, beta, running_mean, running_var,
                    eps=1e-5, row_block=None):
    # x_nchw: (N, Cin, H, W) like the PyTorch module. Returns (N, Cout, 2H, 2W), f32.
    N, Cin, H, W = x_nchw.shape
    Cout = w.shape[0]
    Ho, Wo = 2 * H, 2 * W

    if row_block is None:
        row_block = _pick_row_block(Ho, Wo)
    th = row_block
    assert Ho % th == 0
    assert th == Ho or (th % 8 == 0 and (th * Wo) % 128 == 0), (th, Wo)
    n_tiles = Ho // th

    # bf16 activations in the layout the first matmul consumes directly: (N, Cin*H, W).
    x_flat = x_nchw.astype(jnp.bfloat16).reshape(N, Cin * H, W)

    # Row-interp matrix (+ conv zero-pad rows); per-tile halo'd slices, bf16.
    uh_pad = _upsample_pad_matrix(H)                                 # (Ho+2, H)
    row_idx = jnp.arange(n_tiles)[:, None] * th + jnp.arange(th + 2)[None, :]
    uh_tiles = uh_pad[row_idx].astype(jnp.bfloat16)                  # (n_tiles, th+2, H)

    # Column-interp matrix (+ conv zero-pad cols), replicated/shifted for kx = 0, 1, 2.
    uwt = _upsample_pad_matrix(W).T                                  # (W, Wo+2)
    cw3 = jnp.concatenate([uwt[:, kx:kx + Wo] for kx in range(3)],
                          axis=1).astype(jnp.bfloat16)               # (W, 3*Wo)

    # Fold BN (eval) scale into the conv weights; bias absorbs conv bias + BN shift.
    # TODO(synk): BatchNorm uses running statistics (eval mode); training-mode batch
    # statistics are not reproduced.
    scale = gamma.astype(jnp.float32) / jnp.sqrt(running_var.astype(jnp.float32) + eps)
    w_s = w.astype(jnp.float32) * scale[:, None, None, None]         # (Cout, Cin, 3, 3)
    w9 = jnp.transpose(w_s, (2, 3, 0, 1)).reshape(9, Cout, Cin).astype(jnp.bfloat16)
    bias = (beta.astype(jnp.float32)
            + (b.astype(jnp.float32) - running_mean.astype(jnp.float32)) * scale
            ).reshape(Cout, 1)

    # Rough per-step VMEM estimate -> explicit scoped-VMEM limit (v5e default is 16 MiB).
    est = (
        2 * Cin * H * W * 2                  # x block (double buffered), bf16
        + 2 * (th + 2) * H * 2               # uh block
        + 2 * W * 3 * Wo * 2                 # cw3
        + 2 * 9 * Cout * Cin * 2             # w9
        + 2 * Cout * 4                       # bias
        + 2 * Cout * th * Wo * 4             # out block
        + Cin * H * 3 * Wo * (4 + 2)         # q (f32 + bf16 copy)
        + Cin * (th + 2) * 3 * Wo * (4 + 2)  # p (f32 + bf16 copy)
        + Cin * th * Wo * 2                  # live tap
        + Cout * th * Wo * 4                 # accumulator
    )
    vmem_limit = int(min(max(2 * est, 8 * 1024 * 1024), 64 * 1024 * 1024))

    out_flat = pl.pallas_call(
        _decoder_tile_kernel,
        out_shape=jax.ShapeDtypeStruct((N, Cout, Ho * Wo), jnp.float32),
        grid=(N, n_tiles),
        in_specs=[
            pl.BlockSpec((1, Cin * H, W), lambda n, t: (n, 0, 0)),   # x: fetched once per image
            pl.BlockSpec((1, th + 2, H), lambda n, t: (t, 0, 0)),
            pl.BlockSpec((W, 3 * Wo), lambda n, t: (0, 0)),
            pl.BlockSpec((9, Cout, Cin), lambda n, t: (0, 0, 0)),
            pl.BlockSpec((Cout, 1), lambda n, t: (0, 0)),
        ],
        out_specs=pl.BlockSpec((1, Cout, th * Wo), lambda n, t: (n, 0, t)),
        compiler_params=pltpu.CompilerParams(
            dimension_semantics=("parallel", "parallel"),
            vmem_limit_bytes=vmem_limit),
    )(x_flat, uh_tiles, cw3, w9, bias)

    # Free (contiguous) reshape back to NCHW spatial dims; no transpose of the output.
    return out_flat.reshape(N, Cout, Ho, Wo)


def _reference_decoder(x, w, b, gamma, beta, mean, var, eps=1e-5):
    # Pure-JAX f32 reference: upsample (align_corners=True) -> conv 3x3 p=1 -> BN eval -> ReLU.
    N, C, H, W = x.shape

    def coords(n_in, n_out):
        if n_in == 1:
            z = jnp.zeros((n_out,), jnp.int32)
            return z, z, jnp.zeros((n_out,), jnp.float32)
        src = jnp.arange(n_out, dtype=jnp.float32) * (n_in - 1) / (n_out - 1)
        i0 = jnp.clip(jnp.floor(src).astype(jnp.int32), 0, n_in - 2)
        return i0, i0 + 1, src - i0.astype(jnp.float32)

    h0, h1, fh = coords(H, 2 * H)
    w0, w1, fw = coords(W, 2 * W)
    xr = (x[:, :, h0, :] * (1.0 - fh)[None, None, :, None]
          + x[:, :, h1, :] * fh[None, None, :, None])
    xu = (xr[:, :, :, w0] * (1.0 - fw)[None, None, None, :]
          + xr[:, :, :, w1] * fw[None, None, None, :])
    y = jax.lax.conv_general_dilated(
        xu, w, window_strides=(1, 1), padding=((1, 1), (1, 1)),
        dimension_numbers=("NCHW", "OIHW", "NCHW"))
    y = y + b[None, :, None, None]
    y = (gamma[None, :, None, None] * (y - mean[None, :, None, None])
         / jnp.sqrt(var + eps)[None, :, None, None] + beta[None, :, None, None])
    return jnp.maximum(y, 0.0)


if __name__ == "__main__":
    key = jax.random.PRNGKey(0)
    k1, k2, k3, k4, k5, k6, k7 = jax.random.split(key, 7)

    N, Cin, H, W = 2, 4, 16, 16
    Cout = 8

    x = jax.random.normal(k1, (N, Cin, H, W), jnp.float32)
    w = 0.1 * jax.random.normal(k2, (Cout, Cin, 3, 3), jnp.float32)   # conv weight
    b = 0.1 * jax.random.normal(k3, (Cout,), jnp.float32)             # conv bias
    gamma = 1.0 + 0.1 * jax.random.normal(k4, (Cout,), jnp.float32)   # BN weight
    beta = 0.1 * jax.random.normal(k5, (Cout,), jnp.float32)          # BN bias
    running_mean = 0.1 * jax.random.normal(k6, (Cout,), jnp.float32)
    running_var = jnp.abs(jax.random.normal(k7, (Cout,), jnp.float32)) + 0.5

    # row_block=16 exercises the halo'd multi-row-tile path: grid = (2, 2), th*Wo = 512.
    out = decoder_forward(x, w, b, gamma, beta, running_mean, running_var,
                          row_block=16)
    out = jax.block_until_ready(out)

    assert out.shape == (N, Cout, 2 * H, 2 * W), out.shape
    assert bool(jnp.all(out >= 0.0))   # ReLU sanity check

    ref = _reference_decoder(x, w, b, gamma, beta, running_mean, running_var)
    max_err = float(jnp.max(jnp.abs(out - ref)))
    # bf16 MXU inputs throughout (interp + conv), f32 accumulation -> a few 1e-2 worst case.
    assert bool(jnp.allclose(out, ref, atol=5e-2, rtol=5e-2)), f"max|diff|={max_err}"

    print("KERNEL_OK")
</pallas_src>

<mosaic_0001>
module attributes {stable_mosaic.version = 11 : i64} {
  func.func @_decoder_tile_kernel(%arg0: i32, %arg1: i32, %arg2: memref<1x64x16xbf16, #tpu.memory_space<vmem>>, %arg3: memref<1x18x16xbf16, #tpu.memory_space<vmem>>, %arg4: memref<16x96xbf16, #tpu.memory_space<vmem>>, %arg5: memref<9x8x4xbf16, #tpu.memory_space<vmem>>, %arg6: memref<8x1xf32, #tpu.memory_space<vmem>>, %arg7: memref<1x8x512xf32, #tpu.memory_space<vmem>>) attributes {dimension_semantics = [#tpu.dimension_semantics<parallel>, #tpu.dimension_semantics<parallel>], iteration_bounds = array<i64: 2, 2>, scalar_prefetch = 0 : i64, scratch_operands = 0 : i64, tpu.core_type = #tpu.core_type<tc>, window_params = [{transform_indices = @transform_0, window_bounds = array<i64: 1, 64, 16>}, {transform_indices = @transform_1, window_bounds = array<i64: 1, 18, 16>}, {pipeline_mode = #tpu.pipeline_mode<synchronous>, transform_indices = @transform_2, window_bounds = array<i64: 16, 96>}, {pipeline_mode = #tpu.pipeline_mode<synchronous>, transform_indices = @transform_3, window_bounds = array<i64: 9, 8, 4>}, {pipeline_mode = #tpu.pipeline_mode<synchronous>, transform_indices = @transform_4, window_bounds = array<i64: 8, 1>}, {transform_indices = @transform_5, window_bounds = array<i64: 1, 8, 512>}]} {
    %c0 = arith.constant 0 : index
    %c0_0 = arith.constant 0 : index
    %c0_1 = arith.constant 0 : index
    %0 = vector.load %arg2[%c0, %c0_0, %c0_1] : memref<1x64x16xbf16, #tpu.memory_space<vmem>>, vector<1x64x16xbf16>
    %1 = vector.shape_cast %0 : vector<1x64x16xbf16> to vector<64x16xbf16>
    %c0_2 = arith.constant 0 : index
    %c0_3 = arith.constant 0 : index
    %2 = vector.load %arg4[%c0_2, %c0_3] : memref<16x96xbf16, #tpu.memory_space<vmem>>, vector<16x96xbf16>
    %cst = arith.constant dense<0.000000e+00> : vector<64x96xf32>
    %3 = tpu.matmul %1, %2, %cst {dimension_numbers = #tpu.dot_dimension_numbers<[1], [0], [0], [1], [0, 0, 1, 1], [], []>} : vector<64x16xbf16>, vector<16x96xbf16>, vector<64x96xf32> -> vector<64x96xf32>
    %4 = arith.truncf %3 : vector<64x96xf32> to vector<64x96xbf16>
    %5 = vector.shape_cast %4 : vector<64x96xbf16> to vector<4x16x96xbf16>
    %c0_4 = arith.constant 0 : index
    %c0_5 = arith.constant 0 : index
    %c0_6 = arith.constant 0 : index
    %6 = vector.load %arg3[%c0_4, %c0_5, %c0_6] : memref<1x18x16xbf16, #tpu.memory_space<vmem>>, vector<1x18x16xbf16>
    %7 = vector.shape_cast %6 : vector<1x18x16xbf16> to vector<18x16xbf16>
    %8 = vector.shape_cast %7 : vector<18x16xbf16> to vector<1x18x16xbf16>
    %9 = vector.shape_cast %8 : vector<1x18x16xbf16> to vector<1x18x16xbf16>
    %10 = vector.broadcast %9 : vector<1x18x16xbf16> to vector<4x18x16xbf16>
    %cst_7 = arith.constant dense<0.000000e+00> : vector<4x18x96xf32>
    %11 = tpu.matmul %10, %5, %cst_7 {dimension_numbers = #tpu.dot_dimension_numbers<[2], [1], [1], [2], [0, 0, 0, 1, 1, 2], [0], [0]>} : vector<4x18x16xbf16>, vector<4x16x96xbf16>, vector<4x18x96xf32> -> vector<4x18x96xf32>
    %12 = arith.truncf %11 : vector<4x18x96xf32> to vector<4x18x96xbf16>
    %cst_8 = arith.constant 0.000000e+00 : f32
    %13 = vector.broadcast %cst_8 : f32 to vector<8x512xf32>
    %14 = vector.extract_strided_slice %12 {offsets = [0, 0, 0], sizes = [4, 16, 32], strides = [1, 1, 1]} : vector<4x18x96xbf16> to vector<4x16x32xbf16>
    %15 = vector.shape_cast %14 : vector<4x16x32xbf16> to vector<4x512xbf16>
    %c0_9 = arith.constant 0 : index
    %c0_10 = arith.constant 0 : index
    %c0_11 = arith.constant 0 : index
    %16 = vector.load %arg5[%c0_9, %c0_10, %c0_11] : memref<9x8x4xbf16, #tpu.memory_space<vmem>>, vector<1x8x4xbf16>
    %17 = vector.shape_cast %16 : vector<1x8x4xbf16> to vector<8x4xbf16>
    %cst_12 = arith.constant dense<0.000000e+00> : vector<8x512xf32>
    %18 = tpu.matmul %17, %15, %cst_12 {dimension_numbers = #tpu.dot_dimension_numbers<[1], [0], [0], [1], [0, 0, 1, 1], [], []>} : vector<8x4xbf16>, vector<4x512xbf16>, vector<8x512xf32> -> vector<8x512xf32>
    %19 = arith.addf %13, %18 : vector<8x512xf32>
    %20 = vector.extract_strided_slice %12 {offsets = [0, 0, 32], sizes = [4, 16, 32], strides = [1, 1, 1]} : vector<4x18x96xbf16> to vector<4x16x32xbf16>
    %21 = vector.shape_cast %20 : vector<4x16x32xbf16> to vector<4x512xbf16>
    %c1 = arith.constant 1 : index
    %c0_13 = arith.constant 0 : index
    %c0_14 = arith.constant 0 : index
    %22 = vector.load %arg5[%c1, %c0_13, %c0_14] : memref<9x8x4xbf16, #tpu.memory_space<vmem>>, vector<1x8x4xbf16>
    %23 = vector.shape_cast %22 : vector<1x8x4xbf16> to vector<8x4xbf16>
    %cst_15 = arith.constant dense<0.000000e+00> : vector<8x512xf32>
    %24 = tpu.matmul %23, %21, %cst_15 {dimension_numbers = #tpu.dot_dimension_numbers<[1], [0], [0], [1], [0, 0, 1, 1], [], []>} : vector<8x4xbf16>, vector<4x512xbf16>, vector<8x512xf32> -> vector<8x512xf32>
    %25 = arith.addf %19, %24 : vector<8x512xf32>
    %26 = vector.extract_strided_slice %12 {offsets = [0, 0, 64], sizes = [4, 16, 32], strides = [1, 1, 1]} : vector<4x18x96xbf16> to vector<4x16x32xbf16>
    %27 = vector.shape_cast %26 : vector<4x16x32xbf16> to vector<4x512xbf16>
    %c2 = arith.constant 2 : index
    %c0_16 = arith.constant 0 : index
    %c0_17 = arith.constant 0 : index
    %28 = vector.load %arg5[%c2, %c0_16, %c0_17] : memref<9x8x4xbf16, #tpu.memory_space<vmem>>, vector<1x8x4xbf16>
    %29 = vector.shape_cast %28 : vector<1x8x4xbf16> to vector<8x4xbf16>
    %cst_18 = arith.constant dense<0.000000e+00> : vector<8x512xf32>
    %30 = tpu.matmul %29, %27, %cst_18 {dimension_numbers = #tpu.dot_dimension_numbers<[1], [0], [0], [1], [0, 0, 1, 1], [], []>} : vector<8x4xbf16>, vector<4x512xbf16>, vector<8x512xf32> -> vector<8x512xf32>
    %31 = arith.addf %25, %30 : vector<8x512xf32>
    %32 = vector.extract_strided_slice %12 {offsets = [0, 1, 0], sizes = [4, 16, 32], strides = [1, 1, 1]} : vector<4x18x96xbf16> to vector<4x16x32xbf16>
    %33 = vector.shape_cast %32 : vector<4x16x32xbf16> to vector<4x512xbf16>
    %c3 = arith.constant 3 : index
    %c0_19 = arith.constant 0 : index
    %c0_20 = arith.constant 0 : index
    %34 = vector.load %arg5[%c3, %c0_19, %c0_20] : memref<9x8x4xbf16, #tpu.memory_space<vmem>>, vector<1x8x4xbf16>
    %35 = vector.shape_cast %34 : vector<1x8x4xbf16> to vector<8x4xbf16>
    %cst_21 = arith.constant dense<0.000000e+00> : vector<8x512xf32>
    %36 = tpu.matmul %35, %33, %cst_21 {dimension_numbers = #tpu.dot_dimension_numbers<[1], [0], [0], [1], [0, 0, 1, 1], [], []>} : vector<8x4xbf16>, vector<4x512xbf16>, vector<8x512xf32> -> vector<8x512xf32>
    %37 = arith.addf %31, %36 : vector<8x512xf32>
    %38 = vector.extract_strided_slice %12 {offsets = [0, 1, 32], sizes = [4, 16, 32], strides = [1, 1, 1]} : vector<4x18x96xbf16> to vector<4x16x32xbf16>
    %39 = vector.shape_cast %38 : vector<4x16x32xbf16> to vector<4x512xbf16>
    %c4 = arith.constant 4 : index
    %c0_22 = arith.constant 0 : index
    %c0_23 = arith.constant 0 : index
    %40 = vector.load %arg5[%c4, %c0_22, %c0_23] : memref<9x8x4xbf16, #tpu.memory_space<vmem>>, vector<1x8x4xbf16>
    %41 = vector.shape_cast %40 : vector<1x8x4xbf16> to vector<8x4xbf16>
    %cst_24 = arith.constant dense<0.000000e+00> : vector<8x512xf32>
    %42 = tpu.matmul %41, %39, %cst_24 {dimension_numbers = #tpu.dot_dimension_numbers<[1], [0], [0], [1], [0, 0, 1, 1], [], []>} : vector<8x4xbf16>, vector<4x512xbf16>, vector<8x512xf32> -> vector<8x512xf32>
    %43 = arith.addf %37, %42 : vector<8x512xf32>
    %44 = vector.extract_strided_slice %12 {offsets = [0, 1, 64], sizes = [4, 16, 32], strides = [1, 1, 1]} : vector<4x18x96xbf16> to vector<4x16x32xbf16>
    %45 = vector.shape_cast %44 : vector<4x16x32xbf16> to vector<4x512xbf16>
    %c5 = arith.constant 5 : index
    %c0_25 = arith.constant 0 : index
    %c0_26 = arith.constant 0 : index
    %46 = vector.load %arg5[%c5, %c0_25, %c0_26] : memref<9x8x4xbf16, #tpu.memory_space<vmem>>, vector<1x8x4xbf16>
    %47 = vector.shape_cast %46 : vector<1x8x4xbf16> to vector<8x4xbf16>
    %cst_27 = arith.constant dense<0.000000e+00> : vector<8x512xf32>
    %48 = tpu.matmul %47, %45, %cst_27 {dimension_numbers = #tpu.dot_dimension_numbers<[1], [0], [0], [1], [0, 0, 1, 1], [], []>} : vector<8x4xbf16>, vector<4x512xbf16>, vector<8x512xf32> -> vector<8x512xf32>
    %49 = arith.addf %43, %48 : vector<8x512xf32>
    %50 = vector.extract_strided_slice %12 {offsets = [0, 2, 0], sizes = [4, 16, 32], strides = [1, 1, 1]} : vector<4x18x96xbf16> to vector<4x16x32xbf16>
    %51 = vector.shape_cast %50 : vector<4x16x32xbf16> to vector<4x512xbf16>
    %c6 = arith.constant 6 : index
    %c0_28 = arith.constant 0 : index
    %c0_29 = arith.constant 0 : index
    %52 = vector.load %arg5[%c6, %c0_28, %c0_29] : memref<9x8x4xbf16, #tpu.memory_space<vmem>>, vector<1x8x4xbf16>
    %53 = vector.shape_cast %52 : vector<1x8x4xbf16> to vector<8x4xbf16>
    %cst_30 = arith.constant dense<0.000000e+00> : vector<8x512xf32>
    %54 = tpu.matmul %53, %51, %cst_30 {dimension_numbers = #tpu.dot_dimension_numbers<[1], [0], [0], [1], [0, 0, 1, 1], [], []>} : vector<8x4xbf16>, vector<4x512xbf16>, vector<8x512xf32> -> vector<8x512xf32>
    %55 = arith.addf %49, %54 : vector<8x512xf32>
    %56 = vector.extract_strided_slice %12 {offsets = [0, 2, 32], sizes = [4, 16, 32], strides = [1, 1, 1]} : vector<4x18x96xbf16> to vector<4x16x32xbf16>
    %57 = vector.shape_cast %56 : vector<4x16x32xbf16> to vector<4x512xbf16>
    %c7 = arith.constant 7 : index
    %c0_31 = arith.constant 0 : index
    %c0_32 = arith.constant 0 : index
    %58 = vector.load %arg5[%c7, %c0_31, %c0_32] : memref<9x8x4xbf16, #tpu.memory_space<vmem>>, vector<1x8x4xbf16>
    %59 = vector.shape_cast %58 : vector<1x8x4xbf16> to vector<8x4xbf16>
    %cst_33 = arith.constant dense<0.000000e+00> : vector<8x512xf32>
    %60 = tpu.matmul %59, %57, %cst_33 {dimension_numbers = #tpu.dot_dimension_numbers<[1], [0], [0], [1], [0, 0, 1, 1], [], []>} : vector<8x4xbf16>, vector<4x512xbf16>, vector<8x512xf32> -> vector<8x512xf32>
    %61 = arith.addf %55, %60 : vector<8x512xf32>
    %62 = vector.extract_strided_slice %12 {offsets = [0, 2, 64], sizes = [4, 16, 32], strides = [1, 1, 1]} : vector<4x18x96xbf16> to vector<4x16x32xbf16>
    %63 = vector.shape_cast %62 : vector<4x16x32xbf16> to vector<4x512xbf16>
    %c8 = arith.constant 8 : index
    %c0_34 = arith.constant 0 : index
    %c0_35 = arith.constant 0 : index
    %64 = vector.load %arg5[%c8, %c0_34, %c0_35] : memref<9x8x4xbf16, #tpu.memory_space<vmem>>, vector<1x8x4xbf16>
    %65 = vector.shape_cast %64 : vector<1x8x4xbf16> to vector<8x4xbf16>
    %cst_36 = arith.constant dense<0.000000e+00> : vector<8x512xf32>
    %66 = tpu.matmul %65, %63, %cst_36 {dimension_numbers = #tpu.dot_dimension_numbers<[1], [0], [0], [1], [0, 0, 1, 1], [], []>} : vector<8x4xbf16>, vector<4x512xbf16>, vector<8x512xf32> -> vector<8x512xf32>
    %67 = arith.addf %61, %66 : vector<8x512xf32>
    %c0_37 = arith.constant 0 : index
    %c0_38 = arith.constant 0 : index
    %68 = vector.load %arg6[%c0_37, %c0_38] : memref<8x1xf32, #tpu.memory_space<vmem>>, vector<8x1xf32>
    %69 = vector.broadcast %68 : vector<8x1xf32> to vector<8x512xf32>
    %70 = arith.addf %67, %69 : vector<8x512xf32>
    %cst_39 = arith.constant 0.000000e+00 : f32
    %71 = vector.broadcast %cst_39 : f32 to vector<8x512xf32>
    %72 = arith.maximumf %70, %71 : vector<8x512xf32>
    %c0_40 = arith.constant 0 : index
    %c0_41 = arith.constant 0 : index
    %c0_42 = arith.constant 0 : index
    %73 = vector.load %arg7[%c0_40, %c0_41, %c0_42] : memref<1x8x512xf32, #tpu.memory_space<vmem>>, vector<1x8x512xf32>
    %74 = vector.shape_cast %73 : vector<1x8x512xf32> to vector<8x512xf32>
    %75 = vector.shape_cast %72 : vector<8x512xf32> to vector<1x8x512xf32>
    tpu.vector_store %arg7[%c0_40, %c0_41, %c0_42], %75 {strides = array<i32>} : memref<1x8x512xf32, #tpu.memory_space<vmem>>, vector<1x8x512xf32>,
    return
  }
  func.func @transform_0(%arg0: i32, %arg1: i32) -> (i32, i32, i32) {
    %c0_i32 = arith.constant 0 : i32
    %c0_i32_0 = arith.constant 0 : i32
    %c0_i32_1 = arith.constant 0 : i32
    return %arg0, %c0_i32, %c0_i32_0 : i32, i32, i32
  }
  func.func @transform_1(%arg0: i32, %arg1: i32) -> (i32, i32, i32) {
    %c0_i32 = arith.constant 0 : i32
    %c0_i32_0 = arith.constant 0 : i32
    %c0_i32_1 = arith.constant 0 : i32
    return %arg1, %c0_i32, %c0_i32_0 : i32, i32, i32
  }
  func.func @transform_2(%arg0: i32, %arg1: i32) -> (i32, i32) {
    %c0_i32 = arith.constant 0 : i32
    %c0_i32_0 = arith.constant 0 : i32
    %c0_i32_1 = arith.constant 0 : i32
    return %c0_i32, %c0_i32_0 : i32, i32
  }
  func.func @transform_3(%arg0: i32, %arg1: i32) -> (i32, i32, i32) {
    %c0_i32 = arith.constant 0 : i32
    %c0_i32_0 = arith.constant 0 : i32
    %c0_i32_1 = arith.constant 0 : i32
    %c0_i32_2 = arith.constant 0 : i32
    return %c0_i32, %c0_i32_0, %c0_i32_1 : i32, i32, i32
  }
  func.func @transform_4(%arg0: i32, %arg1: i32) -> (i32, i32) {
    %c0_i32 = arith.constant 0 : i32
    %c0_i32_0 = arith.constant 0 : i32
    %c0_i32_1 = arith.constant 0 : i32
    return %c0_i32, %c0_i32_0 : i32, i32
  }
  func.func @transform_5(%arg0: i32, %arg1: i32) -> (i32, i32, i32) {
    %c0_i32 = arith.constant 0 : i32
    %c0_i32_0 = arith.constant 0 : i32
    return %arg0, %c0_i32, %arg1 : i32, i32, i32
  }
}

</mosaic_0001>

<bundles_post_ra>
// kernel: tpu_custom_call.1
= control target key start
LH: loop header
LB: loop body
LE: loop exit
PB: predicated region body
PF: predicated region fallthrough
CT: control target
= control target key end

     0   :  { %10 = vsyncpa [#allocation3], 0  ;;  %s5419_s0 = inlined_call_operand.vmem [shape: bf16[2,64,16], index: 0, kind: input, shape index: {}]   ;;  %s5420_s1 = inlined_call_operand.vmem [shape: bf16[2,18,16], index: 1, kind: input, shape index: {}]   ;;  %s5421_s2 = inlined_call_operand.vmem [shape: bf16[16,96], index: 2, kind: input, shape index: {}]   ;;  %s5422_s3 = inlined_call_operand.vmem [shape: bf16[9,8,4], index: 3, kind: input, shape index: {}]   ;;  %s5423_s4 = inlined_call_operand.vmem [shape: f32[8,1], index: 4, kind: input, shape index: {}]   ;;  %s5424_s5 = inlined_call_operand.hbm [shape: f32[2,8,1024], index: 5, kind: output, shape index: {}]  }
   0x1   :  { %12 = vsyncpa [#allocation3 + $0x1], 0  ;;  %s3974_s18 = smov 0   ;;  %s3976_s19 = smov 0  }
   0x2   :  { %s3978_s20 = smov 0   ;;  %s3980_s21 = smov 0  }
   0x3   :  { %s3982_s22 = smov 0   ;;  %s3984_s23 = smov 0  }
   0x4   :  { %s3986_s24 = smov 0   ;;  %s3988_s25 = smov 0  }
   0x5 LB: > { %s3625_s26 = sadd.s32 4294967295, %s3935_s25   ;;  %s3626_s27 = sadd.s32 4294967294, %s3935_s25   ;;  %s3935_s25 = sphi %s3988_s25, %s18_s25   ;;  %s3931_s24 = sphi %s3986_s24, %s5468_s24   ;;  %s3927_s23 = sphi %s3984_s23, %s5467_s23   ;;  %s3923_s22 = sphi %s3982_s22, %s5466_s22   ;;  %s3919_s21 = sphi %s3980_s21, %s5465_s21   ;;  %s3915_s20 = sphi %s3978_s20, %s5464_s20   ;;  %s3911_s19 = sphi %s3976_s19, %s5463_s19   ;;  %s3907_s18 = sphi %s3974_s18, %s5462_s18  }
   0x6   : > { %s27_s28 = sadd.s32 1, %s3927_s23  ;;  %s30_s29 = sadd.s32 1, %s3931_s24 }
   0x7   : > { %p28_p0 = scmp.ge.s32.totalorder %s27_s28, 2  ;;  %p164_p1 = scmp.ne.s32.totalorder %s3915_s20, %s3911_s19 }
   0x8   : > { %p165_p2 = scmp.eq.s32.totalorder %s3625_s26, 3  ;;  %p170_p5 = scmp.ne.s32.totalorder %s3911_s19, %s3907_s18 }
   0x9   : > { %s5470_s28 = smov (%p28_p0, %s27_s28), 0  ;;  %s5472_s29 = smov (!%p28_p0, %s30_s29), %s3931_s24 }
   0xa   : > { %s150_s30 = ssub.s32 %s3927_s23, %s5470_s28  ;;  %p4025_p3 = por %p165_p2, %p164_p1 }
   0xb   : > { %p32_p4 = scmp.ge.s32.totalorder %s5472_s29, 2  ;;  %p171_p6 = scmp.eq.s32.totalorder %s3626_s27, 3 }
   0xc   : > { %p3629_p7 = scmp.ge.s32.totalorder %s3935_s25, 1  ;;  %p214_p9 = scmp.lt.s32.totalorder %s3935_s25, 5 }
   0xd   : > { %s5474_s29 = smov (%p32_p4, %s5472_s29), 0  ;;  %p4034_p8 = por %p171_p6, %p170_p5 }
   0xe   : > { %s149_s8 = ssub.s32 %s3931_s24, %s5474_s29  ;;  %s154_s9 = sadd.s32 1, %s3915_s20 }
   0xf   : > { %s151_s10 = sor.u32 %s150_s30, %s149_s8  ;;  %p215_p10 = pnand %p3629_p7, %p214_p9 }
  0x10   : > { %p152_p11 = scmp.eq.s32.totalorder %s151_s10, 0 }
  0x11   : > { %218 = sbr.rel (%p215_p10) target bundleno = 1121 (0x461), region = 40 }
  0x12   : > { %s4043_s11 = scalar_select %p152_p11, %s3915_s20, %s154_s9  }
  0x18   : > { %v3834_v0 = vld [vmem:[%s5421_s2] sm:$0xff]   ;;  %p247_p12 = scmp.lt.s32.totalorder %s3923_s22, 1  ;;  %vm295_vm0 = vcmask 130048   ;;  %p252_p13 = scmp.lt.s32.totalorder %s3919_s21, 1  ;;  %v3937_v19 = vmov 0   ;;  %vm2543_vm1 = vcmask 1046528   ;;  %v620_v42 = vlaneseq }
  0x19   : > { %3721 = vmatprep.subr.bf16.mxu0 %v3834_v0  ;;  %3833 = vset.pattern.permute.xlu0 %v3937_v19  ;;  %s3938_s12 = smov 96   ;;  %v3939_v36 = vmov 1983009808   ;;  %vm1549_vm2 = vsmask.f32 7424  ;;  %s3940_s13 = smov 64  }
  0x1a   : > { %s248_s14 = scalar_select %p247_p12, %s3923_s22, 1  ;;  %3722 = vmatpush3.bf16.msra.mxu0 %v3834_v0  ;;  %v618_v37 = vunpack.c.l.s4 %v3939_v36  ;;  %v4081_v55 = vshrl.u32 %v620_v42, 7  ;;  %vm784_vm3 = vcmask 261120   ;;  %vm788_vm4 = vcmask 523264  }
  0x1b   : > { %s253_s27 = scalar_select %p252_p13, %s3919_s21, 1  ;;  %vm791_vm5 = vcmask 785408   ;;  %vm1046_vm6 = vcmask 1041408   ;;  %vm1042_vm7 = vcmask 31744  }
  0x1c   : > { %s3703_s15 = sshll.u32 %s248_s14, 5  ;;  %v619_v54 = vunpack.c.0.s8 %v618_v37  ;;  %s3942_s14 = smov 32  }
  0x1d   : > { %s251_s26 = scalar_lea.vmem %s5419_s0, %s3703_s15  ;;  %s3755_s30 = smul.u32 12, %s253_s27 }
  0x1e   : > { %v3835_v1 = vld [vmem:[%s251_s26] sm:$0xff]   ;;  %v3836_v2 = vld [vmem:[%s251_s26 + $0x8] sm:$0xff]   ;;  %v3837_v3 = vld [vmem:[%s251_s26 + $0x10] sm:$0xff]   ;;  %s3943_s9 = smov [#allocation2]  }
  0x1f   : > { %3723 = vmatprep.mubr.msk.bf16.mxu0 %vm295_vm0, %v3835_v1  ;;  %v3838_v4 = vld [vmem:[%s251_s26 + $0x18] sm:$0xff]   ;;  %s256_s10 = scalar_lea.vmem %s5420_s1, %s3755_s30 }
  0x20   : > { %3724 = vmatmul.mubr.msk.bf16.vlgmr.msra.gmra.mrb[0].mxu0 %vm295_vm0, %v3836_v2  ;;  %v3839_v5 = vld [vmem:[%s256_s10] sm:$0xff]   ;;  %v3840_v12 = vld [vmem:[%s256_s10 + $0x8] ss:$0 sps:$4 sm:$0x11]   ;;  %s244_s10 = sand.u32 1, %s3911_s19  }
  0x21   : > { %3727 = vmatprep.mubr.msk.bf16.mxu0 %vm295_vm0, %v3837_v3  ;;  %3733 = vmatprep.mubr.msk.bf16.mxu1 %vm295_vm0, %v3839_v5  ;;  %s3524_s30 = scalar_lea.sflag [#allocation3], %s244_s10 }
  0x28   : > { %3728 = vmatmul.mubr.msk.bf16.gmra.mrb[4].mxu0 %vm295_vm0, %v3838_v4 }
  0x29   : > { %3745 = vmatprep.mubr.msk.bf16.mxu0 %vm295_vm0, %v3839_v5 }
  0xf3   : > { %v3725_v6 = vpop.f32.mrb[0].mxu0 }
  0xf4   : > { %v342_v7 = vpop.f32.mrb[1].mxu0 }
  0xf5   : > { %v3726_v8 = vpop.f32.mrb[2].mxu0 }
  0xf6   : > { %v374_v9 = vpack.c.bf16 %v3726_v8, %v3725_v6  ;;  %v345_v10 = vpop.f32.mrb[3].mxu0 }
  0xf7   : > { %v373_v11 = vpack.c.bf16 %v345_v10, %v342_v7 }
  0xf9   : > { %3731 = vmatprep.subr.bf16.mxu1 %v373_v11 }
  0xfa   : > { %3732 = vmatpush3.bf16.msra.mxu1 %v373_v11 }
  0xfb   : > { %v3729_v13 = vpop.f32.mrb[4].mxu0  ;;  %3737 = vmatprep.subr.bf16.mxu1 %v374_v9 }
  0xfc   : > { %v358_v14 = vpop.f32.mrb[5].mxu0 }
  0xfd   : > { %v3730_v15 = vpop.f32.mrb[6].mxu0  ;;  %3734 = vmatmul.mubr.msk.bf16.vlgmr.msra.gmra.mrb[0].mxu1 %vm295_vm0, %v3840_v12 }
  0xfe   : > { %v376_v16 = vpack.c.bf16 %v3730_v15, %v3729_v13  ;;  %v361_v17 = vpop.f32.mrb[7].mxu0  ;;  %3738 = vmatpush3.bf16.msra.mxu1 %v374_v9  ;;  %3739 = vmatprep.mubr.msk.bf16.mxu1 %vm295_vm0, %v3839_v5 }
  0xff   : > { %v375_v18 = vpack.c.bf16 %v361_v17, %v358_v14  ;;  %v4106_v17 = vpack.i.b16 %v3937_v19, %v3937_v19 }
 0x100   : > { %3749 = vmatprep.subr.bf16.mxu1 %v376_v16 }
 0x101   : > { %3743 = vmatprep.subr.bf16.mxu0 %v375_v18 }
 0x102   : > { %3744 = vmatpush3.bf16.msra.mxu0 %v375_v18 }
 0x105   : > { %3740 = vmatmul.mubr.msk.bf16.vlgmr.msra.gmra.mrb[4].mxu1 %vm295_vm0, %v3840_v12  ;;  %3746 = vmatmul.mubr.msk.bf16.vlgmr.msra.gmra.mrb[8].mxu0 %vm295_vm0, %v3840_v12 }
 0x106   : > { %3750 = vmatpush3.bf16.msra.mxu1 %v376_v16  ;;  %3751 = vmatprep.mubr.msk.bf16.mxu1 %vm295_vm0, %v3839_v5 }
 0x107   : > { %1087 = vmatprep.mubr.bf16.mxu0 %v3937_v19 }
 0x10d   : > { %3752 = vmatmul.mubr.msk.bf16.vlgmr.msra.gmra.mrb[8].mxu1 %vm295_vm0, %v3840_v12 }
 0x10e   : > { %1128 = vmatprep.mubr.bf16.mxu1 %v3937_v19 }
 0x1d0   : > { %v3735_v20 = vpop.f32.mrb[0].mxu1 }
 0x1d1   : > { %v587_v21 = vpack.c.bf16 %v3735_v20, %v3735_v20  ;;  %v428_v22 = vpop.f32.mrb[1].mxu1 }
 0x1d2   : > { %v3736_v23 = vpop.f32.mrb[2].mxu1 }
 0x1d3   : > { %v431_v24 = vpop.f32.mrb[3].mxu1  ;;  %v1556_v25 = vshll.u32 %v587_v21, 16  ;;  %v2545_v26 = vrot.slane %v587_v21, 1 }
 0x1d4   : > { %v586_v27 = vpack.c.bf16 %v431_v24, %v428_v22 }
 0x1d5   : > { %v1558_v31 = vrot.slane %v1556_v25, 1  ;;  %v4114_v25 = vsub.s32 %v619_v54, %v4081_v55 }
 0x1d6   : > { %820 = vrot.lane.b32.xlu0 %v586_v27, %s3938_s12  ;;  %v2544_v28 = vrot.slane %v586_v27, 1  ;;  %v598_v29 = vshrl.u32 %v586_v27, 16  ;;  %v1551_v30 = vshll.u32 %v586_v27, 16 }
 0x1d8   : > { %v3741_v32 = vpop.f32.mrb[4].mxu1  ;;  %v3747_v33 = vpop.f32.mrb[8].mxu0  ;;  %v2546_v34 = vsel %vm2543_vm1, %v2544_v28, %v2545_v26  ;;  %v1553_v35 = vrot.slane %v1551_v30, 1 }
 0x1d9   : > { %v589_v38 = vpack.c.bf16 %v3741_v32, %v3741_v32  ;;  %v591_v39 = vpack.c.bf16 %v3747_v33, %v3747_v33  ;;  %v476_v40 = vpop.f32.mrb[5].mxu1  ;;  %v524_v41 = vpop.f32.mrb[9].mxu0  ;;  %v2560_v5 = vshrl.u32 %v2546_v34, 16 }
 0x1da   : > { %1230 = vrot.lane.b32.xlu0 %v586_v27, %s3940_s13  ;;  %v3742_v43 = vpop.f32.mrb[6].mxu1  ;;  %v3748_v44 = vpop.f32.mrb[10].mxu0  ;;  %v1554_v45 = vor.u32 %v1553_v35, %v598_v29 }
 0x1db   : > { %v1566_v46 = vshll.u32 %v589_v38, 16  ;;  %v479_v47 = vpop.f32.mrb[7].mxu1  ;;  %v527_v48 = vpop.f32.mrb[11].mxu0  ;;  %v2548_v49 = vrot.slane %v589_v38, 1  ;;  %v2551_v53 = vrot.slane %v591_v39, 1  ;;  %v1576_v61 = vshll.u32 %v591_v39, 16 }
 0x1dc   : > { %v4076_v50 = vpack.c.bf16 %v479_v47, %v476_v40  ;;  %v4078_v51 = vpack.c.bf16 %v527_v48, %v524_v41  ;;  %v1559_v52 = vsel %vm1549_vm2, %v1554_v45, %v1558_v31 }
 0x1dd   : > { %v1568_v60 = vrot.slane %v1566_v46, 1  ;;  %v1578_v14 = vrot.slane %v1576_v61, 1  ;;  %v1594_v24 = vshrl.u32 %v1559_v52, 16 }
 0x1de   : > { %2867 = vrot.lane.b32.xlu0 %v2546_v34, %s3938_s12  ;;  %824 = vrot.lane.b32.xlu1 %v4078_v51, %s3938_s12  ;;  %v2547_v56 = vrot.slane %v4076_v50, 1  ;;  %v599_v57 = vshrl.u32 %v4076_v50, 16  ;;  %v1561_v58 = vshll.u32 %v4076_v50, 16  ;;  %v2550_v59 = vrot.slane %v4078_v51, 1 }
 0x1df   : > { %v1571_v62 = vshll.u32 %v4078_v51, 16  ;;  %v4092_v63 = vpack.i.b16 %v4076_v50, %v586_v27  ;;  %v606_v12 = vshrl.u32 %v4078_v51, 16 }
 0x1e0   : > { %v3753_v0 = vpop.f32.mrb[8].mxu1  ;;  %v2549_v1 = vsel %vm2543_vm1, %v2547_v56, %v2548_v49  ;;  %v1563_v2 = vrot.slane %v1561_v58, 1  ;;  %v4096_v3 = vsel %vm2543_vm1, %v2550_v59, %v2551_v53  ;;  %v600_v4 = vpack.i.b16 %v599_v57, %v598_v29 }
 0x1e1   : > { %v593_v6 = vpack.c.bf16 %v3753_v0, %v3753_v0  ;;  %v572_v7 = vpop.f32.mrb[9].mxu1  ;;  %v4098_v8 = vpack.i.b16 %v2549_v1, %v2546_v34  ;;  %v2561_v9 = vshrl.u32 %v2549_v1, 16  ;;  %v1573_v13 = vrot.slane %v1571_v62, 1 }
 0x1e2   : > { %3186 = vrot.lane.b32.xlu0 %v2546_v34, %s3940_s13  ;;  %v3754_v10 = vpop.f32.mrb[10].mxu1  ;;  %1232 = vrot.lane.b32.xlu1 %v4076_v50, %s3940_s13  ;;  %v1564_v11 = vor.u32 %v1563_v2, %v599_v57  ;;  %v2568_v34 = vshrl.u32 %v4096_v3, 16  ;;  %v682_v35 = vcombine.high %v600_v4, %v4106_v17  ;;  %v4139_v42 = vrot.slane %v600_v4, %v4114_v25 }
 0x1e3   : > { %v1586_v15 = vshll.u32 %v593_v6, 16  ;;  %v575_v16 = vpop.f32.mrb[11].mxu1  ;;  %v4108_v18 = vpack.i.b16 %v2561_v9, %v2560_v5  ;;  %v2554_v20 = vrot.slane %v593_v6, 1  ;;  %v1574_v23 = vor.u32 %v1573_v13, %v606_v12 }
 0x1e4   : > { %v4110_v21 = vpack.c.bf16 %v575_v16, %v572_v7  ;;  %v1569_v22 = vsel %vm1549_vm2, %v1564_v11, %v1568_v60  ;;  %v4143_v43 = vrot.slane %v4092_v63, %v4114_v25  ;;  %v4155_v49 = vrot.slane %v682_v35, %v4114_v25 }
 0x1e5   : > { %v4116_v26 = vpack.i.b16 %v1569_v22, %v1559_v52  ;;  %v1595_v27 = vshrl.u32 %v1569_v22, 16  ;;  %v4122_v29 = vsel %vm1549_vm2, %v1574_v23, %v1578_v14  ;;  %v1588_v32 = vrot.slane %v1586_v15, 1 }
 0x1e6   : > { %1901 = vrot.lane.b32.xlu0 %v1559_v52, %s3938_s12  ;;  %2869 = vrot.lane.b32.xlu1 %v2549_v1, %s3938_s12  ;;  %v2553_v28 = vrot.slane %v4110_v21, 1  ;;  %v607_v30 = vshrl.u32 %v4110_v21, 16  ;;  %v1581_v31 = vshll.u32 %v4110_v21, 16  ;;  %v604_v39 = vpack.i.b16 %v4110_v21, %v4078_v51 }
 0x1e7   : > { %v4126_v33 = vpack.i.b16 %v1595_v27, %v1594_v24  ;;  %v1602_v44 = vshrl.u32 %v4122_v29, 16  ;;  %v4188_v4 = vrot.slane %v4098_v8, %v4114_v25  ;;  %v4203_v7 = vrot.slane %v4108_v18, %v4114_v25 }
 0x1e8   : > { %v4131_v36 = vsel %vm2543_vm1, %v2553_v28, %v2554_v20  ;;  %v1583_v37 = vrot.slane %v1581_v31, 1  ;;  %v608_v38 = vpack.i.b16 %v607_v30, %v606_v12  ;;  %v4152_v47 = vrot.slane %v604_v39, %v4114_v25 }
 0x1e9   : > { %v2569_v40 = vshrl.u32 %v4131_v36, 16  ;;  %v2566_v41 = vpack.i.b16 %v4131_v36, %v4096_v3  ;;  %v631_v2 = vcombine.high %v604_v39, %v4106_v17  ;;  %v2572_v10 = vcombine.high %v4098_v8, %v4106_v17 }
 0x1ea   : > { %2220 = vrot.lane.b32.xlu0 %v1559_v52, %s3940_s13  ;;  %3188 = vrot.lane.b32.xlu1 %v2549_v1, %s3940_s13  ;;  %v1584_v45 = vor.u32 %v1583_v37, %v607_v30  ;;  %v4149_v46 = vrot.slane %v608_v38, %v4114_v25  ;;  %v697_v53 = vcombine.high %v608_v38, %v4106_v17  ;;  %v3941_v23 = vmov 1934713408  }
 0x1eb   : > { %v2570_v48 = vpack.i.b16 %v2569_v40, %v2568_v34  ;;  %v616_v52 = vcombine.high %v4092_v63, %v4106_v17  ;;  %v646_v57 = vcombine.low %v4143_v43, %v4152_v47  ;;  %v647_v62 = vcombine.high %v4143_v43, %v4152_v47 }
 0x1ec   : > { %v4161_v54 = vsel %vm1549_vm2, %v1584_v45, %v1588_v32  ;;  %v712_v56 = vcombine.low %v4139_v42, %v4149_v46  ;;  %v713_v58 = vcombine.high %v4139_v42, %v4149_v46  ;;  %v4173_v61 = vrot.slane %v697_v53, %v4114_v25 }
 0x1ed   : > { %v1603_v59 = vshrl.u32 %v4161_v54, 16  ;;  %v1600_v60 = vpack.i.b16 %v4161_v54, %v4122_v29  ;;  %v4181_v63 = vrot.slane %v2566_v41, %v4114_v25  ;;  %v4191_v5 = vrot.slane %v616_v52, %v4114_v25 }
 0x1ee   : > { %822 = vrot.lane.b32.xlu0 %v4076_v50, %s3938_s12  ;;  %1903 = vrot.lane.b32.xlu1 %v1569_v22, %s3938_s12  ;;  %v728_v1 = vcombine.low %v4155_v49, %v4173_v61  ;;  %v729_v50 = vcombine.high %v4155_v49, %v4173_v61  ;;  %v4199_v6 = vrot.slane %v631_v2, %v4114_v25  ;;  %v649_v24 = vunpack.c.l.s4 %v3941_v23 }
 0x1ef   : > { %v1604_v0 = vpack.i.b16 %v1603_v59, %v1602_v44  ;;  %v4206_v9 = vrot.slane %v2570_v48, %v4114_v25  ;;  %v2602_v11 = vcombine.low %v4188_v4, %v4181_v63  ;;  %v2587_v15 = vcombine.high %v2566_v41, %v4106_v17 }
 0x1f0   : > { %v663_v12 = vcombine.high %v4191_v5, %v4199_v6  ;;  %v2603_v8 = vcombine.high %v4188_v4, %v4181_v63  ;;  %v2638_v16 = vcombine.high %v4108_v18, %v4106_v17  ;;  %v2653_v20 = vcombine.high %v2570_v48, %v4106_v17 }
 0x1f1   : > { %v2668_v13 = vcombine.low %v4203_v7, %v4206_v9  ;;  %v2669_v14 = vcombine.high %v4203_v7, %v4206_v9  ;;  %v4240_v18 = vrot.slane %v2572_v10, %v4114_v25  ;;  %v4243_v30 = vrot.slane %v2587_v15, %v4114_v25 }
 0x1f2   : > { %1234 = vrot.lane.b32.xlu0 %v4078_v51, %s3940_s13  ;;  %2222 = vrot.lane.b32.xlu1 %v1569_v22, %s3940_s13  ;;  %v662_v51 = vcombine.low %v4191_v5, %v4199_v6  ;;  %v4231_v22 = vrot.slane %v1600_v60, %v4114_v25  ;;  %v4234_v27 = vrot.slane %v2638_v16, %v4114_v25 }
 0x1f3   : > { %v4237_v28 = vrot.slane %v2653_v20, %v4114_v25  ;;  %v4247_v31 = vrot.slane %v4116_v26, %v4114_v25  ;;  %v2618_v35 = vcombine.low %v4240_v18, %v4243_v30  ;;  %v2619_v37 = vcombine.high %v4240_v18, %v4243_v30 }
 0x1f4   : > { %v4263_v38 = vrot.slane %v4126_v33, %v4114_v25  ;;  %v1606_v41 = vcombine.high %v4116_v26, %v4106_v17  ;;  %v1621_v44 = vcombine.high %v1600_v60, %v4106_v17  ;;  %v1672_v26 = vcombine.high %v4126_v33, %v4106_v17 }
 0x1f5   : > { %v2684_v32 = vcombine.low %v4234_v27, %v4237_v28  ;;  %v2685_v34 = vcombine.high %v4234_v27, %v4237_v28  ;;  %v1636_v39 = vcombine.low %v4247_v31, %v4231_v22  ;;  %v1637_v40 = vcombine.high %v4247_v31, %v4231_v22 }
 0x1f6   : > { %826 = vrot.lane.b32.xlu1 %v4110_v21, %s3938_s12  ;;  %2871 = vrot.lane.b32.xlu0 %v4096_v3, %s3938_s12  ;;  %v1687_v52 = vcombine.high %v1604_v0, %v4106_v17  ;;  %v4290_v59 = vrot.slane %v1606_v41, %v4114_v25  ;;  %v4293_v60 = vrot.slane %v1621_v44, %v4114_v25 }
 0x1f8   : > { %v4303_v2 = vrot.slane %v1687_v52, %v4114_v25  ;;  %v1652_v33 = vcombine.low %v4290_v59, %v4293_v60 }
 0x1fa   : > { %1236 = vrot.lane.b32.xlu1 %v4110_v21, %s3940_s13  ;;  %3190 = vrot.lane.b32.xlu0 %v4096_v3, %s3940_s13  ;;  %v4266_v21 = vrot.slane %v1604_v0, %v4114_v25  ;;  %v650_v3 = vunpack.c.0.s8 %v649_v24  ;;  %v1653_v0 = vcombine.high %v4290_v59, %v4293_v60 }
 0x1fc   : > { %v1702_v45 = vcombine.low %v4263_v38, %v4266_v21  ;;  %v1703_v48 = vcombine.high %v4263_v38, %v4266_v21  ;;  %v4284_v53 = vsub.s32 %v650_v3, %v4081_v55  ;;  %v4300_v55 = vrot.slane %v1672_v26, %v4114_v25 }
 0x1fe   : > { %2873 = vrot.lane.b32.xlu1 %v4131_v36, %s3938_s12  ;;  %1905 = vrot.lane.b32.xlu0 %v4122_v29, %s3938_s12  ;;  %v1718_v10 = vcombine.low %v4300_v55, %v4303_v2  ;;  %v1719_v15 = vcombine.high %v4300_v55, %v4303_v2  ;;  %v736_v16 = vrot.slane %v728_v1, %v4284_v53 }
 0x1ff   : > { %v4343_v20 = vrot.slane %v647_v62, %v4284_v53  ;;  %v743_v43 = vrot.slane %v729_v50, %v4284_v53  ;;  %v2676_v49 = vrot.slane %v2668_v13, %v4284_v53  ;;  %v4379_v61 = vrot.slane %v2602_v11, %v4284_v53 }
 0x200   : > { %v2683_v50 = vrot.slane %v2669_v14, %v4284_v53  ;;  %v746_v6 = vcombine.high %v736_v16, %v3937_v19  ;;  %v4397_v11 = vrot.slane %v2603_v8, %v4284_v53  ;;  %v2692_v7 = vrot.slane %v2684_v32, %v4284_v53 }
 0x201   : > { %v679_v42 = vcombine.high %v4343_v20, %v3937_v19  ;;  %v2634_v5 = vcombine.high %v4379_v61, %v3937_v19  ;;  %v4411_v9 = vrot.slane %v2618_v35, %v4284_v53  ;;  %v747_v63 = vcombine.high %v743_v43, %v3937_v19 }
 0x202   : > { %3192 = vrot.lane.b32.xlu1 %v4131_v36, %s3940_s13  ;;  %2224 = vrot.lane.b32.xlu0 %v4122_v29, %s3940_s13  ;;  %v720_v36 = vrot.slane %v712_v56, %v4284_v53  ;;  %v4317_v29 = vrot.slane %v646_v57, %v4284_v53  ;;  %v727_v57 = vrot.slane %v713_v58, %v4284_v53 }
 0x203   : > { %v4365_v58 = vrot.slane %v663_v12, %v4284_v53  ;;  %v2636_v4 = vcombine.high %v4411_v9, %v3937_v19  ;;  %v2699_v12 = vrot.slane %v2685_v34, %v4284_v53  ;;  %v2700_v13 = vcombine.high %v2676_v49, %v3937_v19 }
 0x204   : > { %v678_v56 = vcombine.high %v4317_v29, %v3937_v19  ;;  %v744_v47 = vcombine.high %v720_v36, %v3937_v19  ;;  %v745_v1 = vcombine.high %v727_v57, %v3937_v19  ;;  %v4429_v14 = vrot.slane %v2619_v37, %v4284_v53 }
 0x205   : > { %5435 = vst [vmem:[#allocation6_spill] sm:$0xff] %v4365_v58  ;;  %v681_v62 = vcombine.high %v4365_v58, %v3937_v19  ;;  %v1710_v23 = vrot.slane %v1702_v45, %v4284_v53  ;;  %v4443_v24 = vrot.slane %v1636_v39, %v4284_v53  ;;  %v2701_v27 = vcombine.high %v2683_v50, %v3937_v19 }
 0x206   : > { %1907 = vrot.lane.b32.xlu1 %v4161_v54, %s3938_s12  ;;  %749 = vrot.lane.b32.xlu0 %v720_v36, %s3942_s14  ;;  %v2637_v8 = vcombine.high %v4429_v14, %v3937_v19  ;;  %v1717_v18 = vrot.slane %v1703_v48, %v4284_v53  ;;  %v2702_v30 = vcombine.high %v2692_v7, %v3937_v19 }
 0x207   : > { %v1668_v28 = vcombine.high %v4443_v24, %v3937_v19  ;;  %v4461_v32 = vrot.slane %v1637_v40, %v4284_v53  ;;  %v1726_v35 = vrot.slane %v1718_v10, %v4284_v53  ;;  %v4475_v37 = vrot.slane %v1652_v33, %v4284_v53 }
 0x208   : > { %v2703_v22 = vcombine.high %v2699_v12, %v3937_v19  ;;  %v1733_v38 = vrot.slane %v1719_v15, %v4284_v53  ;;  %v1734_v21 = vcombine.high %v1710_v23, %v3937_v19  ;;  %v4493_v3 = vrot.slane %v1653_v0, %v4284_v53 }
 0x209   : > { %v1669_v34 = vcombine.high %v4461_v32, %v3937_v19  ;;  %v1670_v31 = vcombine.high %v4475_v37, %v3937_v19  ;;  %v1736_v41 = vcombine.high %v1726_v35, %v3937_v19  ;;  %v1735_v45 = vcombine.high %v1717_v18, %v3937_v19 }
 0x20a   : > { %2226 = vrot.lane.b32.xlu1 %v4161_v54, %s3940_s13  ;;  %752 = vrot.lane.b32.xlu0 %v678_v56, %s3940_s13  ;;  %v4346_v54 = vrot.slane %v662_v51, %v4284_v53  ;;  %v2635_v51 = vcombine.high %v4397_v11, %v3937_v19  ;;  %v1671_v40 = vcombine.high %v4493_v3, %v3937_v19 }
 0x20b   : > { %v1737_v52 = vcombine.high %v1733_v38, %v3937_v19 }
 0x20c   : > { %5434 = vst [vmem:[#allocation5_spill] sm:$0xff] %v4346_v54  ;;  %v680_v46 = vcombine.high %v4346_v54, %v3937_v19 }
 0x20e   : > { %758 = vrot.lane.b32.xlu1 %v727_v57, %s3942_s14  ;;  %767 = vrot.lane.b32.xlu0 %v736_v16, %s3942_s14 }
 0x212   : > { %761 = vrot.lane.b32.xlu1 %v679_v42, %s3940_s13  ;;  %770 = vrot.lane.b32.xlu0 %v680_v46, %s3940_s13 }
 0x216   : > { %776 = vrot.lane.b32.xlu1 %v743_v43, %s3942_s14  ;;  %755 = vrot.lane.b32.xlu0 %v744_v47, %s3938_s12 }
 0x21a   : > { %779 = vrot.lane.b32.xlu1 %v681_v62, %s3940_s13  ;;  %2705 = vrot.lane.b32.xlu0 %v2676_v49, %s3942_s14 }
 0x21e   : > { %764 = vrot.lane.b32.xlu1 %v745_v1, %s3938_s12  ;;  %2708 = vrot.lane.b32.xlu0 %v2634_v5, %s3940_s13 }
 0x222   : > { %2714 = vrot.lane.b32.xlu1 %v2683_v50, %s3942_s14  ;;  %773 = vrot.lane.b32.xlu0 %v746_v6, %s3938_s12 }
 0x226   : > { %2717 = vrot.lane.b32.xlu1 %v2635_v51, %s3940_s13  ;;  %2723 = vrot.lane.b32.xlu0 %v2692_v7, %s3942_s14 }
 0x22a   : > { %782 = vrot.lane.b32.xlu1 %v747_v63, %s3938_s12  ;;  %2726 = vrot.lane.b32.xlu0 %v2636_v4, %s3940_s13 }
 0x22e   : > { %2732 = vrot.lane.b32.xlu1 %v2699_v12, %s3942_s14  ;;  %2711 = vrot.lane.b32.xlu0 %v2700_v13, %s3938_s12 }
 0x232   : > { %2735 = vrot.lane.b32.xlu1 %v2637_v8, %s3940_s13  ;;  %1739 = vrot.lane.b32.xlu0 %v1710_v23, %s3942_s14 }
 0x236   : > { %2720 = vrot.lane.b32.xlu1 %v2701_v27, %s3938_s12  ;;  %1742 = vrot.lane.b32.xlu0 %v1668_v28, %s3940_s13 }
 0x23a   : > { %1748 = vrot.lane.b32.xlu1 %v1717_v18, %s3942_s14  ;;  %2729 = vrot.lane.b32.xlu0 %v2702_v30, %s3938_s12 }
 0x23e   : > { %1751 = vrot.lane.b32.xlu1 %v1669_v34, %s3940_s13  ;;  %1757 = vrot.lane.b32.xlu0 %v1726_v35, %s3942_s14 }
 0x242   : > { %2738 = vrot.lane.b32.xlu1 %v2703_v22, %s3938_s12  ;;  %1760 = vrot.lane.b32.xlu0 %v1670_v31, %s3940_s13 }
 0x246   : > { %1766 = vrot.lane.b32.xlu1 %v1733_v38, %s3942_s14  ;;  %1745 = vrot.lane.b32.xlu0 %v1734_v21, %s3938_s12 }
 0x248   : > { %v821_v39 = vpop.permute.xlu0 %820 }
 0x249   : > { %v832_v16 = vshrl.u32 %v821_v39, 16 }
 0x24a   : > { %1769 = vrot.lane.b32.xlu1 %v1671_v40, %s3940_s13  ;;  %1763 = vrot.lane.b32.xlu0 %v1736_v41, %s3938_s12 }
 0x24c   : > { %v1231_v44 = vpop.permute.xlu0 %1230 }
 0x24d   : > { %v1242_v28 = vshrl.u32 %v1231_v44, 16 }
 0x24e   : > { %1754 = vrot.lane.b32.xlu1 %v1735_v45, %s3938_s12 }
 0x250   : > { %v4504_v48 = vpop.permute.xlu0 %2867  ;;  %v825_v26 = vpop.permute.xlu1 %824 }
 0x251   : > { %v840_v49 = vshrl.u32 %v825_v26, 16 }
 0x252   : > { %1772 = vrot.lane.b32.xlu1 %v1737_v52, %s3938_s12 }
 0x254   : > { %v4508_v59 = vpop.permute.xlu0 %3186  ;;  %v1233_v60 = vpop.permute.xlu1 %1232 }
 0x255   : > { %v1243_v63 = vshrl.u32 %v1233_v60, 16  ;;  %v4541_v38 = vpack.i.b16 %v1233_v60, %v1231_v44 }
 0x257   : > { %v4543_v21 = vpack.i.b16 %v1243_v63, %v1242_v28 }
 0x258   : > { %v4510_v55 = vpop.permute.xlu0 %1901  ;;  %v4512_v2 = vpop.permute.xlu1 %2869 }
 0x25c   : > { %v4514_v33 = vpop.permute.xlu0 %2220  ;;  %v4516_v0 = vpop.permute.xlu1 %3188 }
 0x260   : > { %v823_v36 = vpop.permute.xlu0 %822  ;;  %v4518_v10 = vpop.permute.xlu1 %1903 }
 0x261   : > { %v833_v57 = vshrl.u32 %v823_v36, 16  ;;  %v4522_v42 = vpack.i.b16 %v823_v36, %v821_v39  ;;  %v1261_v36 = vrot.slane %v4541_v38, %v4114_v25 }
 0x263   : > { %v834_v47 = vpack.i.b16 %v833_v57, %v832_v16  ;;  %v851_v50 = vrot.slane %v4522_v42, %v4114_v25 }
 0x264   : > { %v1235_v15 = vpop.permute.xlu0 %1234  ;;  %v4520_v56 = vpop.permute.xlu1 %2222 }
 0x265   : > { %v917_v4 = vrot.slane %v834_v47, %v4114_v25  ;;  %v1250_v12 = vshrl.u32 %v1235_v15, 16 }
 0x268   : > { %v827_v46 = vpop.permute.xlu1 %826  ;;  %v4524_v43 = vpop.permute.xlu0 %2871 }
 0x269   : > { %v838_v62 = vpack.i.b16 %v827_v46, %v825_v26  ;;  %v841_v1 = vshrl.u32 %v827_v46, 16 }
 0x26b   : > { %v866_v5 = vrot.slane %v838_v62, %v4114_v25  ;;  %v842_v6 = vpack.i.b16 %v841_v1, %v840_v49 }
 0x26c   : > { %v1237_v51 = vpop.permute.xlu1 %1236  ;;  %v4529_v7 = vpop.permute.xlu0 %3190 }
 0x26d   : > { %v875_v13 = vcombine.high %v851_v50, %v866_v5  ;;  %v932_v8 = vrot.slane %v842_v6, %v4114_v25  ;;  %v4533_v23 = vpack.i.b16 %v1237_v51, %v1235_v15  ;;  %v1251_v27 = vshrl.u32 %v1237_v51, 16 }
 0x26e   : > { %v874_v18 = vcombine.low %v851_v50, %v866_v5  ;;  %v1327_v15 = vrot.slane %v4543_v21, %v4114_v25  ;;  %v925_v57 = vcombine.high %v842_v6, %v4106_v17  ;;  %v844_v6 = vcombine.high %v4522_v42, %v4106_v17 }
 0x26f   : > { %v4535_v30 = vpack.i.b16 %v1251_v27, %v1250_v12  ;;  %v941_v22 = vcombine.high %v917_v4, %v932_v8  ;;  %v940_v31 = vcombine.low %v917_v4, %v932_v8  ;;  %v1276_v39 = vrot.slane %v4533_v23, %v4114_v25 }
 0x270   : > { %v4537_v34 = vpop.permute.xlu1 %2873  ;;  %v4539_v35 = vpop.permute.xlu0 %1905  ;;  %v4548_v40 = vrot.slane %v875_v13, %v4284_v53  ;;  %v4559_v44 = vrot.slane %v874_v18, %v4284_v53  ;;  %v910_v4 = vcombine.high %v834_v47, %v4106_v17  ;;  %v859_v12 = vcombine.high %v838_v62, %v4106_v17 }
 0x271   : > { %v1342_v41 = vrot.slane %v4535_v30, %v4114_v25  ;;  %v4553_v45 = vrot.slane %v941_v22, %v4284_v53  ;;  %v4556_v26 = vrot.slane %v940_v31, %v4284_v53  ;;  %v1285_v16 = vcombine.high %v1261_v36, %v1276_v39 }
 0x272   : > { %v907_v46 = vcombine.high %v4548_v40, %v3937_v19  ;;  %v906_v49 = vcombine.high %v4559_v44, %v3937_v19  ;;  %v1284_v5 = vcombine.low %v1261_v36, %v1276_v39  ;;  %v939_v27 = vrot.slane %v925_v57, %v4114_v25 }
 0x273   : > { %986 = vrot.lane.b32.xlu1 %v4553_v45, %s3942_s14  ;;  %977 = vrot.lane.b32.xlu0 %v4556_v26, %s3942_s14  ;;  %v1351_v1 = vcombine.high %v1327_v15, %v1342_v41  ;;  %v1350_v63 = vcombine.low %v1327_v15, %v1342_v41  ;;  %v4592_v8 = vrot.slane %v1285_v16, %v4284_v53 }
 0x274   : > { %v4561_v52 = vpop.permute.xlu1 %3192  ;;  %v4563_v60 = vpop.permute.xlu0 %2224  ;;  %v4603_v18 = vrot.slane %v1284_v5, %v4284_v53  ;;  %v873_v42 = vrot.slane %v859_v12, %v4114_v25  ;;  %v924_v22 = vrot.slane %v910_v4, %v4114_v25  ;;  %v858_v31 = vrot.slane %v844_v6, %v4114_v25 }
 0x275   : > { %v4589_v13 = vrot.slane %v1351_v1, %v4284_v53  ;;  %v4596_v28 = vrot.slane %v1350_v63, %v4284_v53  ;;  %v1317_v39 = vcombine.high %v4592_v8, %v3937_v19  ;;  %v1335_v1 = vcombine.high %v4535_v30, %v4106_v17 }
 0x276   : > { %v957_v41 = vcombine.high %v924_v22, %v939_v27  ;;  %v1316_v36 = vcombine.high %v4603_v18, %v3937_v19  ;;  %v956_v16 = vcombine.low %v924_v22, %v939_v27  ;;  %v890_v4 = vcombine.low %v858_v31, %v873_v42 }
 0x277   : > { %989 = vrot.lane.b32.xlu1 %v907_v46, %s3940_s13  ;;  %980 = vrot.lane.b32.xlu0 %v906_v49, %s3940_s13  ;;  %v891_v46 = vcombine.high %v858_v31, %v873_v42  ;;  %v1269_v49 = vcombine.high %v4533_v23, %v4106_v17  ;;  %v1254_v23 = vcombine.high %v4541_v38, %v4106_v17 }
 0x278   : > { %v4578_v50 = vpop.permute.xlu1 %1907  ;;  %v4580_v51 = vpop.permute.xlu0 %749  ;;  %v4627_v5 = vrot.slane %v957_v41, %v4284_v53  ;;  %v4633_v12 = vrot.slane %v956_v16, %v4284_v53  ;;  %v1320_v30 = vcombine.high %v4543_v21, %v4106_v17  ;;  %v4646_v22 = vrot.slane %v890_v4, %v4284_v53 }
 0x279   : > { %v4630_v63 = vrot.slane %v891_v46, %v4284_v53  ;;  %v1283_v42 = vrot.slane %v1269_v49, %v4114_v25  ;;  %v2888_v46 = vshrl.u32 %v4537_v34, 16  ;;  %v973_v49 = vcombine.high %v4553_v45, %v3937_v19 }
 0x27a   : > { %5439 = vst [vmem:[#allocation10_spill] sm:$0xff] %v4646_v22  ;;  %v908_v38 = vcombine.high %v4646_v22, %v3937_v19  ;;  %v1334_v16 = vrot.slane %v1320_v30, %v4114_v25  ;;  %v2887_v30 = vshrl.u32 %v4524_v43, 16  ;;  %v2885_v45 = vpack.i.b16 %v4537_v34, %v4524_v43 }
 0x27b   : > { %1396 = vrot.lane.b32.xlu1 %v4589_v13, %s3942_s14  ;;  %1387 = vrot.lane.b32.xlu0 %v4596_v28, %s3942_s14  ;;  %5437 = vst [vmem:[#allocation8_spill] sm:$0xff] %v4630_v63  ;;  %v909_v31 = vcombine.high %v4630_v63, %v3937_v19 }
 0x27c   : > { %v4598_v47 = vpop.permute.xlu1 %2226  ;;  %v4600_v62 = vpop.permute.xlu0 %752  ;;  %v2913_v34 = vrot.slane %v2885_v45, %v4114_v25 }
 0x27f   : > { %1399 = vrot.lane.b32.xlu1 %v1317_v39, %s3940_s13  ;;  %1390 = vrot.lane.b32.xlu0 %v1316_v36, %s3940_s13  ;;  %v1349_v39 = vrot.slane %v1335_v1, %v4114_v25  ;;  %v1268_v36 = vrot.slane %v1254_v23, %v4114_v25 }
 0x280   : > { %v4616_v15 = vpop.permute.xlu1 %758  ;;  %v4618_v57 = vpop.permute.xlu0 %767 }
 0x281   : > { %5436 = vst [vmem:[#allocation7_spill] sm:$0xff] %v4618_v57  ;;  %v1367_v1 = vcombine.high %v1334_v16, %v1349_v39  ;;  %v1301_v4 = vcombine.high %v1268_v36, %v1283_v42  ;;  %v1366_v23 = vcombine.low %v1334_v16, %v1349_v39  ;;  %v1300_v54 = vcombine.low %v1268_v36, %v1283_v42 }
 0x282   : > { %v2889_v57 = vpack.i.b16 %v2888_v46, %v2887_v30  ;;  %v1383_v30 = vcombine.high %v4589_v13, %v3937_v19 }
 0x283   : > { %1004 = vrot.lane.b32.xlu1 %v4627_v5, %s3942_s14  ;;  %995 = vrot.lane.b32.xlu0 %v4633_v12, %s3942_s14  ;;  %v4682_v39 = vrot.slane %v1301_v4, %v4284_v53  ;;  %v4685_v42 = vrot.slane %v1366_v23, %v4284_v53 }
 0x284   : > { %v4635_v6 = vpop.permute.xlu1 %761  ;;  %v4637_v27 = vpop.permute.xlu0 %770  ;;  %v2979_v46 = vrot.slane %v2889_v57, %v4114_v25 }
 0x285   : > { %5438 = vst [vmem:[#allocation9_spill] sm:$0xff] %v4637_v27  ;;  %v972_v27 = vcombine.high %v4556_v26, %v3937_v19  ;;  %v4679_v26 = vrot.slane %v1367_v1, %v4284_v53  ;;  %5442 = vst [vmem:[#allocation13_spill] sm:$0xff] %v4682_v39  ;;  %v1319_v1 = vcombine.high %v4682_v39, %v3937_v19 }
 0x287   : > { %1007 = vrot.lane.b32.xlu1 %v909_v31, %s3940_s13  ;;  %998 = vrot.lane.b32.xlu0 %v908_v38, %s3940_s13  ;;  %v2880_v31 = vshrl.u32 %v4512_v2, 16  ;;  %v2879_v38 = vshrl.u32 %v4504_v48, 16 }
 0x288   : > { %v4656_v21 = vpop.permute.xlu1 %776  ;;  %v4658_v41 = vpop.permute.xlu0 %755 }
 0x289   : > { %5440 = vst [vmem:[#allocation11_spill] sm:$0xff] %v4656_v21  ;;  %v2881_v43 = vpack.i.b16 %v2880_v31, %v2879_v38 }
 0x28b   : > { %992 = vrot.lane.b32.xlu1 %v973_v49, %s3938_s12  ;;  %983 = vrot.lane.b32.xlu0 %v972_v27, %s3938_s12  ;;  %v4690_v49 = vrot.slane %v1300_v54, %v4284_v53  ;;  %v2877_v27 = vpack.i.b16 %v4512_v2, %v4504_v48  ;;  %v2964_v2 = vrot.slane %v2881_v43, %v4114_v25 }
 0x28c   : > { %v4669_v58 = vpop.permute.xlu1 %779  ;;  %v2706_v21 = vpop.permute.xlu0 %2705 }
 0x28d   : > { %5441 = vst [vmem:[#allocation12_spill] sm:$0xff] %v4669_v58  ;;  %5443 = vst [vmem:[#allocation14_spill] sm:$0xff] %v4690_v49  ;;  %v1318_v54 = vcombine.high %v4690_v49, %v3937_v19  ;;  %v2898_v48 = vrot.slane %v2877_v27, %v4114_v25  ;;  %v2988_v38 = vcombine.high %v2964_v2, %v2979_v46 }
 0x28e   : > { %v2987_v63 = vcombine.low %v2964_v2, %v2979_v46 }
 0x28f   : > { %1414 = vrot.lane.b32.xlu1 %v4679_v26, %s3942_s14  ;;  %1405 = vrot.lane.b32.xlu0 %v4685_v42, %s3942_s14  ;;  %v2922_v31 = vcombine.high %v2898_v48, %v2913_v34  ;;  %v2921_v39 = vcombine.low %v2898_v48, %v2913_v34 }
 0x290   : > { %v4687_v36 = vpop.permute.xlu1 %764  ;;  %v2709_v16 = vpop.permute.xlu0 %2708 }
 0x291   : > { %v4723_v13 = vrot.slane %v2922_v31, %v4284_v53  ;;  %v2891_v31 = vcombine.high %v2877_v27, %v4106_v17  ;;  %v974_v27 = vcombine.high %v4633_v12, %v3937_v19 }
 0x293   : > { %1417 = vrot.lane.b32.xlu1 %v1319_v1, %s3940_s13  ;;  %1408 = vrot.lane.b32.xlu0 %v1318_v54, %s3940_s13  ;;  %v4720_v54 = vrot.slane %v2988_v38, %v4284_v53 }
 0x294   : > { %v2715_v4 = vpop.permute.xlu1 %2714  ;;  %v4704_v23 = vpop.permute.xlu0 %773 }
 0x295   : > { %5444 = vst [vmem:[#allocation15_spill] sm:$0xff] %v4704_v23  ;;  %v2749_v49 = vsel %vm784_vm3, %v4397_v11, %v2715_v4  ;;  %v1382_v23 = vcombine.high %v4596_v28, %v3937_v19  ;;  %v4728_v28 = vrot.slane %v2987_v63, %v4284_v53  ;;  %v4733_v4 = vrot.slane %v2921_v39, %v4284_v53 }
 0x296   : > { %v2742_v63 = vsel %vm784_vm3, %v4379_v61, %v2706_v21  ;;  %v975_v21 = vcombine.high %v4627_v5, %v3937_v19  ;;  %v1922_v5 = vshrl.u32 %v4578_v50, 16 }
 0x297   : > { %1402 = vrot.lane.b32.xlu1 %v1383_v30, %s3938_s12  ;;  %1393 = vrot.lane.b32.xlu0 %v1382_v23, %s3938_s12  ;;  %v2744_v39 = vsel %vm788_vm4, %v2742_v63, %v2709_v16  ;;  %v2953_v23 = vcombine.high %v4733_v4, %v3937_v19 }
 0x298   : > { %v2718_v58 = vpop.permute.xlu1 %2717  ;;  %v2724_v22 = vpop.permute.xlu0 %2723 }
 0x299   : > { %v2751_v1 = vsel %vm788_vm4, %v2749_v49, %v2718_v58  ;;  %v2756_v11 = vsel %vm784_vm3, %v4411_v9, %v2724_v22  ;;  %v2906_v49 = vcombine.high %v2885_v45, %v4106_v17  ;;  %v2972_v9 = vcombine.high %v2889_v57, %v4106_v17 }
 0x29a   : > { %v2954_v22 = vcombine.high %v4723_v13, %v3937_v19  ;;  %v2957_v45 = vcombine.high %v2881_v43, %v4106_v17 }
 0x29b   : > { %3033 = vrot.lane.b32.xlu1 %v4720_v54, %s3942_s14  ;;  %3024 = vrot.lane.b32.xlu0 %v4728_v28, %s3942_s14  ;;  %v2920_v61 = vrot.slane %v2906_v49, %v4114_v25  ;;  %v2986_v16 = vrot.slane %v2972_v9, %v4114_v25 }
 0x29c   : > { %v4730_v34 = vpop.permute.xlu1 %782  ;;  %v2727_v46 = vpop.permute.xlu0 %2726  ;;  %v2971_v49 = vrot.slane %v2957_v45, %v4114_v25  ;;  %v1921_v45 = vshrl.u32 %v4539_v35, 16 }
 0x29d   : > { %v2758_v58 = vsel %vm788_vm4, %v2756_v11, %v2727_v46  ;;  %v2905_v11 = vrot.slane %v2891_v31, %v4114_v25  ;;  %v1914_v31 = vshrl.u32 %v4518_v10, 16 }
 0x29e   : > { %v3004_v9 = vcombine.high %v2971_v49, %v2986_v16 }
 0x29f   : > { %3036 = vrot.lane.b32.xlu1 %v2954_v22, %s3940_s13  ;;  %3027 = vrot.lane.b32.xlu0 %v2953_v23, %s3940_s13  ;;  %v2938_v63 = vcombine.high %v2905_v11, %v2920_v61  ;;  %v1384_v22 = vcombine.high %v4685_v42, %v3937_v19  ;;  %v1913_v42 = vshrl.u32 %v4510_v55, 16 }
 0x2a0   : > { %v2733_v48 = vpop.permute.xlu1 %2732  ;;  %v2712_v2 = vpop.permute.xlu0 %2711 }
 0x2a1   : > { %v4753_v57 = vsel %vm791_vm5, %v2744_v39, %v2712_v2  ;;  %v2763_v30 = vsel %vm784_vm3, %v4429_v14, %v2733_v48  ;;  %v1385_v14 = vcombine.high %v4679_v26, %v3937_v19  ;;  %v3003_v48 = vcombine.low %v2971_v49, %v2986_v16 }
 0x2a2   : > { %5445 = vst [vmem:[#allocation16_spill] sm:$0xff] %v4753_v57  ;;  %v2937_v2 = vcombine.low %v2905_v11, %v2920_v61  ;;  %v4791_v61 = vpack.i.b16 %v1922_v5, %v1921_v45  ;;  %v4794_v16 = vrot.slane %v3004_v9, %v4284_v53  ;;  %v2241_v49 = vshrl.u32 %v4598_v47, 16 }
 0x2a3   : > { %1010 = vrot.lane.b32.xlu1 %v975_v21, %s3938_s12  ;;  %1001 = vrot.lane.b32.xlu0 %v974_v27, %s3938_s12  ;;  %v4804_v27 = vrot.slane %v3003_v48, %v4284_v53  ;;  %v3020_v45 = vcombine.high %v4720_v54, %v3937_v19 }
 0x2a4   : > { %v2736_v43 = vpop.permute.xlu1 %2735  ;;  %v1740_v38 = vpop.permute.xlu0 %1739 }
 0x2a5   : > { %v2765_v46 = vsel %vm788_vm4, %v2763_v30, %v2736_v43  ;;  %v1776_v12 = vsel %vm784_vm3, %v4443_v24, %v1740_v38  ;;  %v4787_v24 = vpack.i.b16 %v4578_v50, %v4539_v35  ;;  %v4797_v30 = vrot.slane %v2938_v63, %v4284_v53 }
 0x2a6   : > { %v4809_v43 = vrot.slane %v2937_v2, %v4284_v53  ;;  %v4811_v38 = vpack.i.b16 %v1914_v31, %v1913_v42  ;;  %v4842_v2 = vpack.i.b16 %v4598_v47, %v4563_v60 }
 0x2a7   : > { %1420 = vrot.lane.b32.xlu1 %v1385_v14, %s3938_s12  ;;  %1411 = vrot.lane.b32.xlu0 %v1384_v22, %s3938_s12  ;;  %5446 = vst [vmem:[#allocation17_spill] sm:$0xff] %v4797_v30  ;;  %v2956_v5 = vcombine.high %v4797_v30, %v3937_v19  ;;  %v2233_v22 = vshrl.u32 %v4520_v56, 16 }
 0x2a8   : > { %v2721_v39 = vpop.permute.xlu1 %2720  ;;  %v1743_v23 = vpop.permute.xlu0 %1742 }
 0x2a9   : > { %v4780_v26 = vsel %vm791_vm5, %v2751_v1, %v2721_v39  ;;  %v4783_v21 = vsel %vm788_vm4, %v1776_v12, %v1743_v23  ;;  %v4801_v1 = vpack.i.b16 %v4518_v10, %v4510_v55  ;;  %v1947_v55 = vrot.slane %v4787_v24, %v4114_v25 }
 0x2aa   : > { %v2013_v10 = vrot.slane %v4791_v61, %v4114_v25  ;;  %v1998_v12 = vrot.slane %v4811_v38, %v4114_v25  ;;  %v2240_v39 = vshrl.u32 %v4563_v60, 16  ;;  %v2232_v23 = vshrl.u32 %v4514_v33, 16 }
 0x2ab   : > { %3051 = vrot.lane.b32.xlu1 %v4794_v16, %s3942_s14  ;;  %3042 = vrot.lane.b32.xlu0 %v4804_v27, %s3942_s14  ;;  %v1932_v14 = vrot.slane %v4801_v1, %v4114_v25  ;;  %v4854_v60 = vpack.i.b16 %v4520_v56, %v4514_v33 }
 0x2ac   : > { %v4806_v35 = vpop.permute.xlu1 %1748  ;;  %v2730_v50 = vpop.permute.xlu0 %2729  ;;  %v4844_v31 = vpack.i.b16 %v2241_v49, %v2240_v39  ;;  %v2022_v42 = vcombine.high %v1998_v12, %v2013_v10  ;;  %v4856_v47 = vpack.i.b16 %v2233_v22, %v2232_v23 }
 0x2ad   : > { %v4816_v11 = vsel %vm791_vm5, %v2758_v58, %v2730_v50  ;;  %v2955_v58 = vcombine.high %v4809_v43, %v3937_v19  ;;  %v1956_v48 = vcombine.high %v1932_v14, %v1947_v55  ;;  %v1955_v50 = vcombine.low %v1932_v14, %v1947_v55 }
 0x2ae   : > { %5447 = vst [vmem:[#allocation18_spill] sm:$0xff] %v4816_v11  ;;  %v4869_v33 = vrot.slane %v2022_v42, %v4284_v53  ;;  %v2317_v49 = vrot.slane %v4856_v47, %v4114_v25  ;;  %v1940_v14 = vcombine.high %v4787_v24, %v4106_v17 }
 0x2af   : > { %3054 = vrot.lane.b32.xlu1 %v2956_v5, %s3940_s13  ;;  %3045 = vrot.lane.b32.xlu0 %v2955_v58, %s3940_s13  ;;  %v3019_v5 = vcombine.high %v4728_v28, %v3937_v19  ;;  %v2021_v58 = vcombine.low %v1998_v12, %v2013_v10  ;;  %v2332_v28 = vrot.slane %v4844_v31, %v4114_v25 }
 0x2b0   : > { %v4831_v9 = vpop.permute.xlu1 %1751  ;;  %v1758_v63 = vpop.permute.xlu0 %1757  ;;  %v4872_v56 = vrot.slane %v1956_v48, %v4284_v53 }
 0x2b1   : > { %v1790_v11 = vsel %vm784_vm3, %v4475_v37, %v1758_v63  ;;  %v2266_v37 = vrot.slane %v4842_v2, %v4114_v25  ;;  %v4875_v10 = vrot.slane %v2021_v58, %v4284_v53  ;;  %v2006_v63 = vcombine.high %v4791_v61, %v4106_v17 }
 0x2b2   : > { %v1988_v22 = vcombine.high %v4872_v56, %v3937_v19  ;;  %v2341_v39 = vcombine.high %v2317_v49, %v2332_v28  ;;  %v1991_v61 = vcombine.high %v4811_v38, %v4106_v17 }
 0x2b3   : > { %3039 = vrot.lane.b32.xlu1 %v3020_v45, %s3938_s12  ;;  %3030 = vrot.lane.b32.xlu0 %v3019_v5, %s3938_s12  ;;  %v1925_v5 = vcombine.high %v4801_v1, %v4106_v17 }
 0x2b4   : > { %v2739_v30 = vpop.permute.xlu1 %2738  ;;  %v1761_v57 = vpop.permute.xlu0 %1760 }
 0x2b5   : > { %v4860_v54 = vsel %vm791_vm5, %v2765_v46, %v2739_v30  ;;  %v1792_v55 = vsel %vm788_vm4, %v1790_v11, %v1761_v57  ;;  %v4880_v57 = vrot.slane %v1955_v50, %v4284_v53  ;;  %v2251_v11 = vrot.slane %v4854_v60, %v4114_v25 }
 0x2b6   : > { %v2340_v50 = vcombine.low %v2317_v49, %v2332_v28  ;;  %v2355_v28 = vrot.slane %v2341_v39, %v4284_v53 }
 0x2b7   : > { %2067 = vrot.lane.b32.xlu1 %v4869_v33, %s3942_s14  ;;  %2058 = vrot.lane.b32.xlu0 %v4875_v10, %s3942_s14  ;;  %v2275_v12 = vcombine.high %v2251_v11, %v2266_v37  ;;  %v2274_v23 = vcombine.low %v2251_v11, %v2266_v37  ;;  %v1987_v45 = vcombine.high %v4880_v57, %v3937_v19 }
 0x2b8   : > { %v1767_v46 = vpop.permute.xlu1 %1766  ;;  %v4877_v30 = vpop.permute.xlu0 %1745  ;;  %v2348_v38 = vrot.slane %v2340_v50, %v4284_v53  ;;  %v2325_v50 = vcombine.high %v4844_v31, %v4106_v17 }
 0x2b9   : > { %v1797_v48 = vsel %vm784_vm3, %v4493_v3, %v1767_v46  ;;  %v1954_v3 = vrot.slane %v1940_v14, %v4114_v25  ;;  %v2020_v46 = vrot.slane %v2006_v63, %v4114_v25  ;;  %v4914_v1 = vrot.slane %v2275_v12, %v4284_v53 }
 0x2ba   : > { %v4920_v49 = vrot.slane %v2274_v23, %v4284_v53  ;;  %v2339_v31 = vrot.slane %v2325_v50, %v4114_v25 }
 0x2bb   : > { %2070 = vrot.lane.b32.xlu1 %v1988_v22, %s3940_s13  ;;  %2061 = vrot.lane.b32.xlu0 %v1987_v45, %s3940_s13  ;;  %v2005_v22 = vrot.slane %v1991_v61, %v4114_v25  ;;  %v2307_v63 = vcombine.high %v4914_v1, %v3937_v19 }
 0x2bc   : > { %v1770_v42 = vpop.permute.xlu1 %1769  ;;  %v1764_v24 = vpop.permute.xlu0 %1763 }
 0x2bd   : > { %v1799_v58 = vsel %vm788_vm4, %v1797_v48, %v1770_v42  ;;  %v4907_v37 = vsel %vm791_vm5, %v1792_v55, %v1764_v24  ;;  %v1939_v55 = vrot.slane %v1925_v5, %v4114_v25  ;;  %v2038_v12 = vcombine.high %v2005_v22, %v2020_v46 }
 0x2be   : > { %v2306_v48 = vcombine.high %v4920_v49, %v3937_v19  ;;  %v2037_v23 = vcombine.low %v2005_v22, %v2020_v46  ;;  %v2259_v24 = vcombine.high %v4842_v2, %v4106_v17 }
 0x2bf   : > { %2386 = vrot.lane.b32.xlu1 %v2355_v28, %s3942_s14  ;;  %2377 = vrot.lane.b32.xlu0 %v2348_v38, %s3942_s14  ;;  %v1972_v14 = vcombine.high %v1939_v55, %v1954_v3  ;;  %v1971_v39 = vcombine.low %v1939_v55, %v1954_v3  ;;  %v2052_v5 = vrot.slane %v2038_v12, %v4284_v53 }
 0x2c0   : > { %v4917_v11 = vpop.permute.xlu1 %1754  ;;  %v2045_v3 = vrot.slane %v2037_v23, %v4284_v53  ;;  %v2310_v55 = vcombine.high %v4856_v47, %v4106_v17  ;;  %v2273_v2 = vrot.slane %v2259_v24, %v4114_v25  ;;  %v2054_v12 = vcombine.high %v4869_v33, %v3937_v19 }
 0x2c1   : > { %v4941_v61 = vrot.slane %v1972_v14, %v4284_v53  ;;  %v4945_v46 = vrot.slane %v1971_v39, %v4284_v53 }
 0x2c3   : > { %2389 = vrot.lane.b32.xlu1 %v2307_v63, %s3940_s13  ;;  %2380 = vrot.lane.b32.xlu0 %v2306_v48, %s3940_s13  ;;  %v1990_v22 = vcombine.high %v4941_v61, %v3937_v19  ;;  %v1989_v14 = vcombine.high %v4945_v46, %v3937_v19 }
 0x2c4   : > { %v1773_v45 = vpop.permute.xlu1 %1772 }
 0x2c5   : > { %v4932_v42 = vsel %vm791_vm5, %v1799_v58, %v1773_v45  ;;  %v2244_v58 = vcombine.high %v4854_v60, %v4106_v17  ;;  %v2324_v60 = vrot.slane %v2310_v55, %v4114_v25  ;;  %v2053_v45 = vcombine.high %v4875_v10, %v3937_v19 }
 0x2c7   : > { %2085 = vrot.lane.b32.xlu1 %v2052_v5, %s3942_s14  ;;  %2076 = vrot.lane.b32.xlu0 %v2045_v3, %s3942_s14  ;;  %v2258_v63 = vrot.slane %v2244_v58, %v4114_v25  ;;  %v2357_v39 = vcombine.high %v2324_v60, %v2339_v31  ;;  %v2356_v23 = vcombine.low %v2324_v60, %v2339_v31  ;;  %v3198_v60 = vshrl.u32 %v4508_v59, 16 }
 0x2c8   : > { %v2373_v31 = vcombine.high %v2355_v28, %v3937_v19  ;;  %v3204_v28 = vpack.i.b16 %v4561_v52, %v4529_v7 }
 0x2c9   : > { %v2291_v47 = vcombine.high %v2258_v63, %v2273_v2  ;;  %v2290_v48 = vcombine.low %v2258_v63, %v2273_v2  ;;  %v2371_v24 = vrot.slane %v2357_v39, %v4284_v53  ;;  %v2364_v58 = vrot.slane %v2356_v23, %v4284_v53 }
 0x2ca   : > { %v3207_v2 = vshrl.u32 %v4561_v52, 16  ;;  %v3206_v63 = vshrl.u32 %v4529_v7, 16  ;;  %v2055_v39 = vcombine.high %v2045_v3, %v3937_v19  ;;  %v3022_v23 = vcombine.high %v4794_v16, %v3937_v19 }
 0x2cb   : > { %2088 = vrot.lane.b32.xlu1 %v1990_v22, %s3940_s13  ;;  %2079 = vrot.lane.b32.xlu0 %v1989_v14, %s3940_s13  ;;  %v4971_v50 = vrot.slane %v2291_v47, %v4284_v53  ;;  %v4975_v55 = vrot.slane %v2290_v48, %v4284_v53  ;;  %v2372_v22 = vcombine.high %v2348_v38, %v3937_v19  ;;  %v3199_v14 = vshrl.u32 %v4516_v0, 16 }
 0x2cc   : > { %v3208_v47 = vpack.i.b16 %v3207_v2, %v3206_v63  ;;  %v3196_v3 = vpack.i.b16 %v4516_v0, %v4508_v59  ;;  %v3225_v7 = vcombine.high %v3204_v28, %v4106_v17  ;;  %v3232_v52 = vrot.slane %v3204_v28, %v4114_v25 }
 0x2cd   : > { %v2309_v33 = vcombine.high %v4971_v50, %v3937_v19  ;;  %v2308_v10 = vcombine.high %v4975_v55, %v3937_v19  ;;  %v3200_v48 = vpack.i.b16 %v3199_v14, %v3198_v60  ;;  %v2374_v59 = vcombine.high %v2364_v58, %v3937_v19 }
 0x2ce   : > { %v3291_v38 = vcombine.high %v3208_v47, %v4106_v17  ;;  %v3210_v14 = vcombine.high %v3196_v3, %v4106_v17  ;;  %v3217_v63 = vrot.slane %v3196_v3, %v4114_v25 }
 0x2cf   : > { %2073 = vrot.lane.b32.xlu1 %v2054_v12, %s3938_s12  ;;  %2064 = vrot.lane.b32.xlu0 %v2053_v45, %s3938_s12  ;;  %v2056_v12 = vcombine.high %v2052_v5, %v3937_v19  ;;  %v3298_v45 = vrot.slane %v3208_v47, %v4114_v25  ;;  %v3021_v5 = vcombine.high %v4804_v27, %v3937_v19 }
 0x2d0   : > { %v3305_v16 = vrot.slane %v3291_v38, %v4114_v25  ;;  %v2375_v27 = vcombine.high %v2371_v24, %v3937_v19  ;;  %v3239_v47 = vrot.slane %v3225_v7, %v4114_v25 }
 0x2d3   : > { %2404 = vrot.lane.b32.xlu1 %v2371_v24, %s3942_s14  ;;  %2395 = vrot.lane.b32.xlu0 %v2364_v58, %s3942_s14  ;;  %v3240_v58 = vcombine.low %v3217_v63, %v3232_v52 }
 0x2d7   : > { %2407 = vrot.lane.b32.xlu1 %v2309_v33, %s3940_s13  ;;  %2398 = vrot.lane.b32.xlu0 %v2308_v10, %s3940_s13  ;;  %v3276_v33 = vcombine.high %v3200_v48, %v4106_v17  ;;  %v3283_v10 = vrot.slane %v3200_v48, %v4114_v25 }
 0x2d9   : > { %v3306_v0 = vcombine.low %v3283_v10, %v3298_v45  ;;  %v3290_v60 = vrot.slane %v3276_v33, %v4114_v25 }
 0x2db   : > { %2392 = vrot.lane.b32.xlu1 %v2373_v31, %s3938_s12  ;;  %2383 = vrot.lane.b32.xlu0 %v2372_v22, %s3938_s12  ;;  %v3307_v22 = vcombine.high %v3283_v10, %v3298_v45  ;;  %v3323_v28 = vcombine.high %v3290_v60, %v3305_v16  ;;  %v3314_v38 = vrot.slane %v3306_v0, %v4284_v53 }
 0x2dc   : > { %v3322_v17 = vcombine.low %v3290_v60, %v3305_v16  ;;  %v3224_v45 = vrot.slane %v3210_v14, %v4114_v25  ;;  %v5035_v16 = vrot.slane %v3240_v58, %v4284_v53 }
 0x2dd   : > { %v3321_v24 = vrot.slane %v3307_v22, %v4284_v53  ;;  %v3337_v3 = vrot.slane %v3323_v28, %v4284_v53 }
 0x2de   : > { %v3256_v10 = vcombine.low %v3224_v45, %v3239_v47  ;;  %v3272_v0 = vcombine.high %v5035_v16, %v3937_v19 }
 0x2df   : > { %2091 = vrot.lane.b32.xlu1 %v2056_v12, %s3938_s12  ;;  %2082 = vrot.lane.b32.xlu0 %v2055_v39, %s3938_s12  ;;  %v3241_v12 = vcombine.high %v3217_v63, %v3232_v52  ;;  %v3330_v52 = vrot.slane %v3322_v17, %v4284_v53  ;;  %v3339_v28 = vcombine.high %v3321_v24, %v3937_v19 }
 0x2e0   : > { %v5047_v14 = vrot.slane %v3256_v10, %v4284_v53  ;;  %v3338_v17 = vcombine.high %v3314_v38, %v3937_v19 }
 0x2e1   : > { %v5031_v33 = vrot.slane %v3241_v12, %v4284_v53 }
 0x2e2   : > { %v3274_v12 = vcombine.high %v5047_v14, %v3937_v19 }
 0x2e3   : > { %3057 = vrot.lane.b32.xlu1 %v3022_v23, %s3938_s12  ;;  %3048 = vrot.lane.b32.xlu0 %v3021_v5, %s3938_s12  ;;  %v3257_v23 = vcombine.high %v3224_v45, %v3239_v47 }
 0x2e5   : > { %v987_v2 = vpop.permute.xlu1 %986  ;;  %v978_v31 = vpop.permute.xlu0 %977  ;;  %v5042_v22 = vrot.slane %v3257_v23, %v4284_v53 }
 0x2e6   : > { %v1021_v45 = vsel %vm784_vm3, %v4548_v40, %v987_v2  ;;  %v1014_v23 = vsel %vm784_vm3, %v4559_v44, %v978_v31  ;;  %v787_v40 = vsel %vm784_vm3, %v4317_v29, %v4580_v51  ;;  %v796_v44 = vsel %vm784_vm3, %v4343_v20, %v4616_v15  ;;  %v3505_v15 = vld [vmem:[%s5423_s4] sm:$0xff] }
 0x2e7   : > { %2410 = vrot.lane.b32.xlu1 %v2375_v27, %s3938_s12  ;;  %2401 = vrot.lane.b32.xlu0 %v2374_v59, %s3938_s12  ;;  %v3273_v27 = vcombine.high %v5031_v33, %v3937_v19  ;;  %v3275_v60 = vcombine.high %v5042_v22, %v3937_v19  ;;  %v790_v31 = vsel %vm788_vm4, %v787_v40, %v4600_v62  ;;  %v5102_v62 = vld [vmem:[%s5422_s3 + $0x4] sm:$0xf] }
 0x2e8   : > { %v793_v29 = vsel %vm791_vm5, %v790_v31, %v4658_v41 }
 0x2e9   : > { %v990_v39 = vpop.permute.xlu1 %989  ;;  %v981_v48 = vpop.permute.xlu0 %980  ;;  %v1140_v41 = vsel %vm1046_vm6, %v793_v29, 0 }
 0x2ea   : > { %v1023_v10 = vsel %vm788_vm4, %v1021_v45, %v990_v39  ;;  %v798_v39 = vsel %vm788_vm4, %v796_v44, %v4635_v6  ;;  %v5449_v44 = vld [vmem:[#allocation10_spill] sm:$0xff] }
 0x2eb   : > { %3352 = vrot.lane.b32.xlu1 %v3321_v24, %s3942_s14  ;;  %3343 = vrot.lane.b32.xlu0 %v3314_v38, %s3942_s14  ;;  %v1016_v24 = vsel %vm788_vm4, %v1014_v23, %v981_v48  ;;  %v800_v20 = vsel %vm791_vm5, %v798_v39, %v4687_v36  ;;  %v5125_v23 = vld [vmem:[%s5422_s3] sm:$0xf] }
 0x2ed   : > { %v5027_v5 = vpop.permute.xlu1 %1396  ;;  %v1388_v7 = vpop.permute.xlu0 %1387 }
 0x2ef   : > { %3370 = vrot.lane.b32.xlu1 %v3337_v3, %s3942_s14  ;;  %3361 = vrot.lane.b32.xlu0 %v3330_v52, %s3942_s14  ;;  %s3699_s14 = sshll.u32 %s3923_s22, 3 }
 0x2f1   : > { %v1400_v25 = vpop.permute.xlu1 %1399  ;;  %v1391_v59 = vpop.permute.xlu0 %1390 }
 0x2f3   : > { %3355 = vrot.lane.b32.xlu1 %v3273_v27, %s3940_s13  ;;  %3346 = vrot.lane.b32.xlu0 %v3272_v0, %s3940_s13  ;;  %v3341_v0 = vcombine.high %v3337_v3, %v3937_v19 }
 0x2f5   : > { %v5051_v63 = vpop.permute.xlu1 %1004  ;;  %v5055_v47 = vpop.permute.xlu0 %995 }
 0x2f7   : > { %3373 = vrot.lane.b32.xlu1 %v3275_v60, %s3940_s13  ;;  %3364 = vrot.lane.b32.xlu0 %v3274_v12, %s3940_s13  ;;  %v3340_v12 = vcombine.high %v3330_v52, %v3937_v19  ;;  %v1431_v52 = vsel %vm784_vm3, %v4592_v8, %v5027_v5  ;;  %v1783_v8 = vsel %vm784_vm3, %v4461_v32, %v4806_v35  ;;  %s3698_s13 = sshll.u32 %s3919_s21, 2 }
 0x2f8   : > { %v1780_v35 = vsel %vm791_vm5, %v4783_v21, %v4877_v30  ;;  %v5448_v30 = vld [vmem:[#allocation8_spill] sm:$0xff]  ;;  %s3536_s15 = sadd.s32 %s3699_s14, %s3698_s13 }
 0x2f9   : > { %v5061_v53 = vpop.permute.xlu1 %1007  ;;  %v5064_v58 = vpop.permute.xlu0 %998  ;;  %v1807_v21 = vsel %vm1046_vm6, %v1780_v35, 0  ;;  %s3700_s21 = sshll.u32 %s3536_s15, 7 }
 0x2fa   : > { %s5364_s27 = scalar_lea.hbm %s5424_s5, %s3700_s21 }
 0x2fb   : > { %3358 = vrot.lane.b32.xlu1 %v3339_v28, %s3938_s12  ;;  %3349 = vrot.lane.b32.xlu0 %v3338_v17, %s3938_s12  ;;  %v1424_v28 = vsel %vm784_vm3, %v4603_v18, %v1388_v7  ;;  %v1433_v17 = vsel %vm788_vm4, %v1431_v52, %v1400_v25  ;;  %v1785_v18 = vsel %vm788_vm4, %v1783_v8, %v4831_v9  ;;  %v5453_v52 = vld [vmem:[#allocation6_spill] sm:$0xff] }
 0x2fc   : > { %v1787_v25 = vsel %vm791_vm5, %v1785_v18, %v4917_v11  ;;  %v3667_v18 = vld [vmem:[%s5422_s3 + $0xc] sm:$0xf] }
 0x2fd   : > { %v993_v27 = vpop.permute.xlu1 %992  ;;  %v984_v60 = vpop.permute.xlu0 %983 }
 0x2fe   : > { %v1025_v38 = vsel %vm791_vm5, %v1023_v10, %v993_v27  ;;  %v1018_v2 = vsel %vm791_vm5, %v1016_v24, %v984_v60  ;;  %v1426_v10 = vsel %vm788_vm4, %v1424_v28, %v1391_v59  ;;  %v5454_v28 = vld [vmem:[#allocation9_spill] sm:$0xff] }
 0x2ff   : > { %3376 = vrot.lane.b32.xlu1 %v3341_v0, %s3938_s12  ;;  %3654 = vmatprep.subr.msk.bf16.mxu0 %vm1046_vm6, %v1025_v38  ;;  %v1047_v48 = vsel %vm1046_vm6, %v1018_v2, 0  ;;  %v3662_v38 = vld [vmem:[%s5422_s3 + $0x8] sm:$0xf]  ;;  %v1028_v2 = vsel %vm784_vm3, %v5449_v44, %v5055_v47 }
 0x300   : > { %3367 = vrot.lane.b32.xlu0 %v3340_v12, %s3938_s12  ;;  %1056 = vmatpush1.bf16.msra.mxu0 %v1047_v48  ;;  %v1030_v39 = vsel %vm788_vm4, %v1028_v2, %v5064_v58  ;;  %s3630_s12 = sshll.u32 %s244_s10, 5 }
 0x301   : > { %v5097_v51 = vpop.permute.xlu1 %1414  ;;  %3658 = vmatprep.subr.msk.bf16.mxu0 %vm1046_vm6, %v800_v20  ;;  %v5108_v6 = vpop.permute.xlu0 %1405  ;;  %v5451_v20 = vld [vmem:[#allocation5_spill] sm:$0xff]  ;;  %s246_s16 = scalar_lea.vmem [#allocation2], %s3630_s12  ;;  %s3845_s12 = sshll.u32 %s3943_s9, 4  ;;  %s3846_s12 = int_to_ptr.vmem [resolvable:$false] %s3845_s12 }
 0x302   : > { %s3540_s22 = sshll.u32 %s246_s16, 4  ;;  %s3847_s13 = scalar_lea.vmem %s3846_s12, 1024  ;;  %s5366_s22 = int_to_ptr.vmem [resolvable:$true] %s3540_s22 }
 0x303   : > { %3655 = vmatmul.mubr.msk.bf16.vlgmr.msra.gmra.mrb[12].mxu0 %vm1042_vm7, %v5102_v62  ;;  %s3841_s8 = scalar_lea.vmem %s5366_s22, 512  ;;  %p3848_p4 = scmp.lt.s32.totalorder %s5366_s22, %s3846_s12 }
 0x304   : > { %3508 = vperm.xlu0 %3833, %v3505_v15   ;;  %1149 = vmatpush1.bf16.msra.mxu0 %v1140_v41  ;;  %v5452_v41 = vld [vmem:[#allocation11_spill] sm:$0xff]  ;;  %p3842_p0 = scmp.ne.s32.totalorder %s5366_s22, %s3841_s8  ;;  %p3849_p5 = scmp.lt.s32.totalorder %s3847_s13, %s3841_s8 }
 0x305   : > { %v1418_v36 = vpop.permute.xlu1 %1417  ;;  %1180 = vmatprep.mubr.bf16.mxu0 %v3937_v19  ;;  %v5114_v3 = vpop.permute.xlu0 %1408  ;;  %v810_v47 = vsel %vm784_vm3, %v5453_v52, %v5452_v41 }
 0x306   : > { %p3843_p1 = pnand %p3842_p0, %p4025_p3  ;;  %p3850_p6 = por %p3849_p5, %p3848_p4 }
 0x308   : > { %p3844_p2 = pneg %p3843_p1 }
 0x309   : > { %v1403_v45 = vpop.permute.xlu1 %1402  ;;  %v1394_v0 = vpop.permute.xlu0 %1393 }
 0x30a   : > { %v1435_v27 = vsel %vm791_vm5, %v1433_v17, %v1403_v45  ;;  %v1428_v5 = vsel %vm791_vm5, %v1426_v10, %v1394_v0  ;;  %v5455_v45 = vld [vmem:[#allocation12_spill] sm:$0xff]  ;;  %p3851_p7 = pnand %p3850_p6, %p3844_p2 }
 0x30b   : > { %3663 = vmatprep.subr.msk.bf16.mxu0 %vm1046_vm6, %v1435_v27  ;;  %v1455_v7 = vsel %vm1046_vm6, %v1428_v5, 0  ;;  %3659 = vmatmul.mubr.msk.bf16.vlgmr.msra.gmra.mrb[16].mxu0 %vm1042_vm7, %v5125_v23  ;;  %v812_v58 = vsel %vm788_vm4, %v810_v47, %v5455_v45  ;;  %v5456_v27 = vld [vmem:[#allocation15_spill] sm:$0xff] }
 0x30c   : > { %1464 = vmatpush1.bf16.msra.mxu0 %v1455_v7  ;;  %1495 = vmatprep.mubr.bf16.mxu0 %v3937_v19  ;;  %v814_v8 = vsel %vm791_vm5, %v812_v58, %v4730_v34 }
 0x30d   : > { %v3034_v59 = vpop.permute.xlu1 %3033  ;;  %3668 = vmatprep.subr.msk.bf16.mxu0 %vm1046_vm6, %v1787_v25  ;;  %v3025_v32 = vpop.permute.xlu0 %3024  ;;  %v5457_v25 = vld [vmem:[#allocation13_spill] sm:$0xff] }
 0x30e   : > { %v3068_v9 = vsel %vm784_vm3, %v4723_v13, %v3034_v59  ;;  %v3061_v11 = vsel %vm784_vm3, %v4733_v4, %v3025_v32  ;;  %v1035_v13 = vsel %vm784_vm3, %v5448_v30, %v5051_v63  ;;  %v5450_v63 = vld [vmem:[#allocation7_spill] sm:$0xff]  ;;  %v1445_v59 = vsel %vm784_vm3, %v5457_v25, %v5097_v51  ;;  %v5458_v51 = vld [vmem:[#allocation14_spill] sm:$0xff] }
 0x30f   : > { %v1037_v4 = vsel %vm788_vm4, %v1035_v13, %v5061_v53  ;;  %v803_v15 = vsel %vm784_vm3, %v5451_v20, %v5450_v63  ;;  %v1447_v35 = vsel %vm788_vm4, %v1445_v59, %v1418_v36  ;;  %v1438_v36 = vsel %vm784_vm3, %v5458_v51, %v5108_v6 }
 0x310   : > { %v805_v17 = vsel %vm788_vm4, %v803_v15, %v5454_v28 }
 0x311   : > { %v3037_v24 = vpop.permute.xlu1 %3036  ;;  %v3028_v12 = vpop.permute.xlu0 %3027  ;;  %v807_v0 = vsel %vm791_vm5, %v805_v17, %v5456_v27 }
 0x312   : > { %v5154_v60 = vsel %vm788_vm4, %v3068_v9, %v3037_v24  ;;  %v5157_v40 = vsel %vm788_vm4, %v3061_v11, %v3028_v12  ;;  %v1144_v32 = vsel %vm1046_vm6, %v807_v0, 0 }
 0x313   : > { %3664 = vmatmul.mubr.msk.bf16.vlgmr.msra.gmra.mrb[20].mxu0 %vm1042_vm7, %v3662_v38 }
 0x314   : > { %1816 = vmatpush1.bf16.msra.mxu0 %v1807_v21  ;;  %1847 = vmatprep.mubr.bf16.mxu0 %v3937_v19 }
 0x315   : > { %v1011_v31 = vpop.permute.xlu1 %1010  ;;  %v1002_v29 = vpop.permute.xlu0 %1001 }
 0x316   : > { %v1039_v48 = vsel %vm791_vm5, %v1037_v4, %v1011_v31  ;;  %v1032_v53 = vsel %vm791_vm5, %v1030_v39, %v1002_v29  ;;  %v1811_v4 = vsel %vm1046_vm6, %v4907_v37, 0 }
 0x317   : > { %3656 = vmatprep.subr.msk.bf16.mxu1 %vm1046_vm6, %v1039_v48  ;;  %v1051_v10 = vsel %vm1046_vm6, %v1032_v53, 0 }
 0x318   : > { %1097 = vmatpush1.bf16.msra.mxu1 %v1051_v10 }
 0x319   : > { %v1421_v5 = vpop.permute.xlu1 %1420  ;;  %3660 = vmatprep.subr.msk.bf16.mxu1 %vm1046_vm6, %v814_v8  ;;  %v1412_v7 = vpop.permute.xlu0 %1411 }
 0x31a   : > { %v1449_v34 = vsel %vm791_vm5, %v1447_v35, %v1421_v5 }
 0x31b   : > { %3657 = vmatmul.mubr.msk.bf16.vlgmr.msra.gmra.mrb[12].mxu1 %vm1042_vm7, %v5102_v62  ;;  %3669 = vmatmul.mubr.msk.bf16.vlgmr.msra.gmra.mrb[24].mxu0 %vm1042_vm7, %v3667_v18  ;;  %v1440_v62 = vsel %vm788_vm4, %v1438_v36, %v5114_v3  ;;  %v3677_v36 = vld [vmem:[%s5422_s3 + $0x14] sm:$0xf] }
 0x31c   : > { %1190 = vmatpush1.bf16.msra.mxu1 %v1144_v32  ;;  %1221 = vmatprep.mubr.bf16.mxu1 %v3937_v19  ;;  %v1442_v11 = vsel %vm791_vm5, %v1440_v62, %v1412_v7 }
 0x31d   : > { %v5203_v9 = vpop.permute.xlu1 %3051  ;;  %3665 = vmatprep.subr.msk.bf16.mxu1 %vm1046_vm6, %v1449_v34  ;;  %v3043_v24 = vpop.permute.xlu0 %3042  ;;  %2166 = vmatprep.mubr.bf16.mxu0 %v3937_v19  ;;  %v1459_v44 = vsel %vm1046_vm6, %v1442_v11, 0 }
 0x31e   : > { %v3075_v21 = vsel %vm784_vm3, %v4809_v43, %v3043_v24 }
 0x321   : > { %v5214_v12 = vpop.permute.xlu1 %3054  ;;  %v3046_v30 = vpop.permute.xlu0 %3045 }
 0x322   : > { %v5219_v13 = vsel %vm788_vm4, %v3075_v21, %v3046_v30 }
 0x323   : > { %3661 = vmatmul.mubr.msk.bf16.vlgmr.msra.gmra.mrb[16].mxu1 %vm1042_vm7, %v5125_v23 }
 0x324   : > { %1505 = vmatpush1.bf16.msra.mxu1 %v1459_v44  ;;  %1536 = vmatprep.mubr.bf16.mxu1 %v3937_v19 }
 0x325   : > { %v5224_v6 = vpop.permute.xlu1 %3039  ;;  %3670 = vmatprep.subr.msk.bf16.mxu1 %vm1046_vm6, %v4932_v42  ;;  %v5229_v3 = vpop.permute.xlu0 %3030 }
 0x329   : > { %v2068_v43 = vpop.permute.xlu1 %2067  ;;  %v2059_v2 = vpop.permute.xlu0 %2058 }
 0x32a   : > { %v2102_v37 = vsel %vm784_vm3, %v4872_v56, %v2068_v43  ;;  %v3672_v56 = vld [vmem:[%s5422_s3 + $0x10] sm:$0xf]  ;;  %v3072_v43 = vsel %vm791_vm5, %v5154_v60, %v5224_v6 }
 0x32b   : > { %3666 = vmatmul.mubr.msk.bf16.vlgmr.msra.gmra.mrb[20].mxu1 %vm1042_vm7, %v3662_v38  ;;  %v2095_v38 = vsel %vm784_vm3, %v4880_v57, %v2059_v2 }
 0x32c   : > { %1857 = vmatpush1.bf16.msra.mxu1 %v1811_v4  ;;  %1888 = vmatprep.mubr.bf16.mxu1 %v3937_v19 }
 0x32d   : > { %v2071_v31 = vpop.permute.xlu1 %2070  ;;  %v2062_v23 = vpop.permute.xlu0 %2061 }
 0x32e   : > { %v2104_v52 = vsel %vm788_vm4, %v2102_v37, %v2071_v31  ;;  %v2097_v53 = vsel %vm788_vm4, %v2095_v38, %v2062_v23  ;;  %v3065_v31 = vsel %vm791_vm5, %v5157_v40, %v5229_v3 }
 0x331   : > { %v2387_v39 = vpop.permute.xlu1 %2386  ;;  %v2378_v48 = vpop.permute.xlu0 %2377 }
 0x332   : > { %v2421_v8 = vsel %vm784_vm3, %v4914_v1, %v2387_v39  ;;  %v2414_v5 = vsel %vm784_vm3, %v4920_v49, %v2378_v48  ;;  %v3682_v39 = vld [vmem:[%s5422_s3 + $0x18] sm:$0xf] }
 0x333   : > { %3671 = vmatmul.mubr.msk.bf16.vlgmr.msra.gmra.mrb[24].mxu1 %vm1042_vm7, %v3667_v18 }
 0x334   : > { %2207 = vmatprep.mubr.bf16.mxu1 %v3937_v19 }
 0x335   : > { %v2390_v29 = vpop.permute.xlu1 %2389  ;;  %v2381_v42 = vpop.permute.xlu0 %2380 }
 0x336   : > { %v2423_v18 = vsel %vm788_vm4, %v2421_v8, %v2390_v29  ;;  %v2416_v25 = vsel %vm788_vm4, %v2414_v5, %v2381_v42 }
 0x339   : > { %v2086_v63 = vpop.permute.xlu1 %2085  ;;  %v2077_v20 = vpop.permute.xlu0 %2076 }
 0x33a   : > { %v2116_v34 = vsel %vm784_vm3, %v4941_v61, %v2086_v63  ;;  %v2109_v49 = vsel %vm784_vm3, %v4945_v46, %v2077_v20  ;;  %v5459_v46 = vld [vmem:[#allocation16_spill] sm:$0xff]  ;;  %v5460_v20 = vld [vmem:[#allocation17_spill] sm:$0xff] }
 0x33b   : > { %v2773_v30 = vsel %vm1046_vm6, %v5459_v46, 0 }
 0x33d   : > { %v2089_v15 = vpop.permute.xlu1 %2088  ;;  %v2080_v41 = vpop.permute.xlu0 %2079 }
 0x33e   : > { %v2118_v24 = vsel %vm788_vm4, %v2116_v34, %v2089_v15  ;;  %v2111_v62 = vsel %vm788_vm4, %v2109_v49, %v2080_v41  ;;  %v3082_v15 = vsel %vm784_vm3, %v5460_v20, %v5203_v9  ;;  %v5461_v41 = vld [vmem:[#allocation18_spill] sm:$0xff] }
 0x33f   : > { %v2777_v37 = vsel %vm1046_vm6, %v5461_v41, 0  ;;  %v3084_v38 = vsel %vm788_vm4, %v3082_v15, %v5214_v12 }
 0x341   : > { %v2074_v47 = vpop.permute.xlu1 %2073  ;;  %v2065_v17 = vpop.permute.xlu0 %2064 }
 0x342   : > { %v2106_v28 = vsel %vm791_vm5, %v2104_v52, %v2074_v47  ;;  %v2099_v45 = vsel %vm791_vm5, %v2097_v53, %v2065_v17 }
 0x343   : > { %3673 = vmatprep.subr.msk.bf16.mxu0 %vm1046_vm6, %v2106_v28  ;;  %v2126_v58 = vsel %vm1046_vm6, %v2099_v45, 0 }
 0x344   : > { %2135 = vmatpush1.bf16.msra.mxu0 %v2126_v58 }
 0x345   : > { %v2405_v10 = vpop.permute.xlu1 %2404  ;;  %v2396_v57 = vpop.permute.xlu0 %2395 }
 0x346   : > { %v2435_v4 = vsel %vm784_vm3, %v4971_v50, %v2405_v10  ;;  %v2428_v60 = vsel %vm784_vm3, %v4975_v55, %v2396_v57  ;;  %v3092_v55 = vsel %vm1046_vm6, %v3065_v31, 0 }
 0x347   : > { %3674 = vmatmul.mubr.msk.bf16.vlgmr.msra.gmra.mrb[28].mxu0 %vm1042_vm7, %v3672_v56 }
 0x348   : > { %2485 = vmatprep.mubr.bf16.mxu0 %v3937_v19 }
 0x349   : > { %v2408_v27 = vpop.permute.xlu1 %2407  ;;  %v2399_v0 = vpop.permute.xlu0 %2398 }
 0x34a   : > { %v2437_v6 = vsel %vm788_vm4, %v2435_v4, %v2408_v27  ;;  %v2430_v50 = vsel %vm788_vm4, %v2428_v60, %v2399_v0 }
 0x34d   : > { %v2393_v7 = vpop.permute.xlu1 %2392  ;;  %v2384_v32 = vpop.permute.xlu0 %2383 }
 0x34e   : > { %v2425_v59 = vsel %vm791_vm5, %v2423_v18, %v2393_v7  ;;  %v2418_v35 = vsel %vm791_vm5, %v2416_v25, %v2384_v32 }
 0x34f   : > { %3678 = vmatprep.subr.msk.bf16.mxu0 %vm1046_vm6, %v2425_v59  ;;  %v2445_v1 = vsel %vm1046_vm6, %v2418_v35, 0  ;;  %v3692_v59 = vld [vmem:[%s5422_s3 + $0x20] sm:$0xf] }
 0x350   : > { %2454 = vmatpush1.bf16.msra.mxu0 %v2445_v1 }
 0x351   : > { %v2092_v51 = vpop.permute.xlu1 %2091  ;;  %3683 = vmatprep.subr.msk.bf16.mxu0 %vm1046_vm6, %v4780_v26  ;;  %v2083_v61 = vpop.permute.xlu0 %2082 }
 0x352   : > { %v2120_v11 = vsel %vm791_vm5, %v2118_v24, %v2092_v51  ;;  %v2113_v21 = vsel %vm791_vm5, %v2111_v62, %v2083_v61 }
 0x353   : > { %3675 = vmatprep.subr.msk.bf16.mxu1 %vm1046_vm6, %v2120_v11  ;;  %v2130_v44 = vsel %vm1046_vm6, %v2113_v21, 0  ;;  %3679 = vmatmul.mubr.msk.bf16.vlgmr.msra.gmra.mrb[32].mxu0 %vm1042_vm7, %v3677_v36 }
 0x354   : > { %2176 = vmatpush1.bf16.msra.mxu1 %v2130_v44  ;;  %2782 = vmatpush1.bf16.msra.mxu0 %v2773_v30 }
 0x355   : > { %v3058_v2 = vpop.permute.xlu1 %3057  ;;  %3688 = vmatprep.subr.msk.bf16.mxu0 %vm1046_vm6, %v3072_v43  ;;  %v3049_v26 = vpop.permute.xlu0 %3048  ;;  %2813 = vmatprep.mubr.bf16.mxu0 %v3937_v19 }
 0x356   : > { %v3086_v52 = vsel %vm791_vm5, %v3084_v38, %v3058_v2  ;;  %v3079_v12 = vsel %vm791_vm5, %v5219_v13, %v3049_v26 }
 0x357   : > { %3676 = vmatmul.mubr.msk.bf16.vlgmr.msra.gmra.mrb[28].mxu1 %vm1042_vm7, %v3672_v56  ;;  %v3096_v17 = vsel %vm1046_vm6, %v3079_v12, 0 }
 0x358   : > { %2526 = vmatprep.mubr.bf16.mxu1 %v3937_v19 }
 0x359   : > { %v2411_v23 = vpop.permute.xlu1 %2410  ;;  %v2402_v29 = vpop.permute.xlu0 %2401 }
 0x35a   : > { %v2439_v48 = vsel %vm791_vm5, %v2437_v6, %v2411_v23  ;;  %v2432_v42 = vsel %vm791_vm5, %v2430_v50, %v2402_v29 }
 0x35b   : > { %3680 = vmatprep.subr.msk.bf16.mxu1 %vm1046_vm6, %v2439_v48  ;;  %v2449_v40 = vsel %vm1046_vm6, %v2432_v42, 0  ;;  %3684 = vmatmul.mubr.msk.bf16.vlgmr.msra.gmra.mrb[36].mxu0 %vm1042_vm7, %v3682_v39 }
 0x35c   : > { %3101 = vmatpush1.bf16.msra.mxu0 %v3092_v55  ;;  %2495 = vmatpush1.bf16.msra.mxu1 %v2449_v40 }
 0x35d   : > { %v3353_v3 = vpop.permute.xlu1 %3352  ;;  %3685 = vmatprep.subr.msk.bf16.mxu1 %vm1046_vm6, %v4860_v54  ;;  %v3344_v63 = vpop.permute.xlu0 %3343  ;;  %3132 = vmatprep.mubr.bf16.mxu0 %v3937_v19  ;;  %v3687_v54 = vld [vmem:[%s5422_s3 + $0x1c] sm:$0xf] }
 0x35e   : > { %v3387_v10 = vsel %vm784_vm3, %v5031_v33, %v3353_v3  ;;  %v3380_v56 = vsel %vm784_vm3, %v5035_v16, %v3344_v63 }
 0x35f   : > { %3681 = vmatmul.mubr.msk.bf16.vlgmr.msra.gmra.mrb[32].mxu1 %vm1042_vm7, %v3677_v36 }
 0x360   : > { %2823 = vmatpush1.bf16.msra.mxu1 %v2777_v37  ;;  %2854 = vmatprep.mubr.bf16.mxu1 %v3937_v19 }
 0x361   : > { %v3371_v47 = vpop.permute.xlu1 %3370  ;;  %3690 = vmatprep.subr.msk.bf16.mxu1 %vm1046_vm6, %v3086_v52  ;;  %v3362_v9 = vpop.permute.xlu0 %3361 }
 0x362   : > { %v3401_v18 = vsel %vm784_vm3, %v5042_v22, %v3371_v47  ;;  %v3394_v16 = vsel %vm784_vm3, %v5047_v14, %v3362_v9 }
 0x363   : > { %3689 = vmatmul.mubr.msk.bf16.vlgmr.msra.gmra.mrb[40].mxu0 %vm1042_vm7, %v3687_v54 }
 0x364   : > { %3451 = vmatprep.mubr.bf16.mxu0 %v3937_v19 }
 0x365   : > { %v3356_v53 = vpop.permute.xlu1 %3355  ;;  %v3347_v28 = vpop.permute.xlu0 %3346 }
 0x366   : > { %v3389_v13 = vsel %vm788_vm4, %v3387_v10, %v3356_v53  ;;  %v3382_v27 = vsel %vm788_vm4, %v3380_v56, %v3347_v28 }
 0x367   : > { %3686 = vmatmul.mubr.msk.bf16.vlgmr.msra.gmra.mrb[36].mxu1 %vm1042_vm7, %v3682_v39 }
 0x368   : > { %3142 = vmatpush1.bf16.msra.mxu1 %v3096_v17  ;;  %3173 = vmatprep.mubr.bf16.mxu1 %v3937_v19 }
 0x369   : > { %v3374_v45 = vpop.permute.xlu1 %3373  ;;  %v3365_v58 = vpop.permute.xlu0 %3364 }
 0x36a   : > { %v3403_v7 = vsel %vm788_vm4, %v3401_v18, %v3374_v45  ;;  %v3396_v32 = vsel %vm788_vm4, %v3394_v16, %v3365_v58 }
 0x36d   : > { %v3359_v57 = vpop.permute.xlu1 %3358  ;;  %v3350_v8 = vpop.permute.xlu0 %3349 }
 0x36e   : > { %v3391_v0 = vsel %vm791_vm5, %v3389_v13, %v3359_v57  ;;  %v3384_v5 = vsel %vm791_vm5, %v3382_v27, %v3350_v8 }
 0x36f   : > { %3693 = vmatprep.subr.msk.bf16.mxu0 %vm1046_vm6, %v3391_v0  ;;  %v3411_v33 = vsel %vm1046_vm6, %v3384_v5, 0  ;;  %3691 = vmatmul.mubr.msk.bf16.vlgmr.msra.gmra.mrb[40].mxu1 %vm1042_vm7, %v3687_v54 }
 0x370   : > { %3420 = vmatpush1.bf16.msra.mxu0 %v3411_v33  ;;  %3492 = vmatprep.mubr.bf16.mxu1 %v3937_v19 }
 0x371   : > { %v3377_v25 = vpop.permute.xlu1 %3376 }
 0x372   : > { %v3405_v22 = vsel %vm791_vm5, %v3403_v7, %v3377_v25  ;;  %v3368_v35 = vpop.permute.xlu0 %3367 }
 0x373   : > { %v3398_v34 = vsel %vm791_vm5, %v3396_v32, %v3368_v35  ;;  %3695 = vmatprep.subr.msk.bf16.mxu1 %vm1046_vm6, %v3405_v22  ;;  %3694 = vmatmul.mubr.msk.bf16.vlgmr.msra.gmra.mrb[44].mxu0 %vm1042_vm7, %v3692_v59 }
 0x374   : > { %v3415_v14 = vsel %vm1046_vm6, %v3398_v34, 0 }
 0x375   : > { %3461 = vmatpush1.bf16.msra.mxu1 %v3415_v14 }
 0x378   : > { %3696 = vmatmul.mubr.msk.bf16.vlgmr.msra.gmra.mrb[44].mxu1 %vm1042_vm7, %v3692_v59 }
 0x3d6   : > { %v1089_v1 = vpop.f32.mrb[12].mxu0 }
 0x3d7   : > { %v1091_v49 = vpop.f32.mrb[13].mxu0 }
 0x3d8   : > { %v1093_v24 = vpop.f32.mrb[14].mxu0 }
 0x3d9   : > { %v1094_v19 = vpop.f32.mrb[15].mxu0 }
 0x3de   : > { %v1182_v51 = vpop.f32.mrb[16].mxu0 }
 0x3df   : > { %v1183_v36 = vadd.f32 %v1182_v51, %v1089_v1  ;;  %v1184_v62 = vpop.f32.mrb[17].mxu0 }
 0x3e0   : > { %v1185_v11 = vadd.f32 %v1184_v62, %v1091_v49  ;;  %v1186_v61 = vpop.f32.mrb[18].mxu0 }
 0x3e1   : > { %v1187_v21 = vpop.f32.mrb[19].mxu0 }
 0x3e6   : > { %v1497_v46 = vpop.f32.mrb[20].mxu0 }
 0x3e7   : > { %v1545_v30 = vadd.f32 %v1497_v46, %v1183_v36  ;;  %v1499_v44 = vpop.f32.mrb[21].mxu0 }
 0x3e8   : > { %v1546_v43 = vadd.f32 %v1499_v44, %v1185_v11  ;;  %v1501_v2 = vpop.f32.mrb[22].mxu0 }
 0x3e9   : > { %v1502_v26 = vpop.f32.mrb[23].mxu0 }
 0x3ee   : > { %v1130_v4 = vpop.f32.mrb[12].mxu1  ;;  %v1849_v31 = vpop.f32.mrb[24].mxu0 }
 0x3ef   : > { %v1132_v60 = vpop.f32.mrb[13].mxu1  ;;  %v1897_v6 = vadd.f32 %v1849_v31, %v1545_v30  ;;  %v1851_v23 = vpop.f32.mrb[25].mxu0 }
 0x3f0   : > { %v1134_v39 = vpop.f32.mrb[14].mxu1  ;;  %v1898_v50 = vadd.f32 %v1851_v23, %v1546_v43  ;;  %v1853_v48 = vpop.f32.mrb[26].mxu0 }
 0x3f1   : > { %v1135_v29 = vpop.f32.mrb[15].mxu1  ;;  %v1854_v42 = vpop.f32.mrb[27].mxu0 }
 0x3f6   : > { %v1223_v55 = vpop.f32.mrb[16].mxu1 }
 0x3f7   : > { %v1224_v40 = vadd.f32 %v1223_v55, %v1130_v4  ;;  %v1225_v3 = vpop.f32.mrb[17].mxu1 }
 0x3f8   : > { %v1226_v63 = vadd.f32 %v1225_v3, %v1132_v60  ;;  %v1227_v20 = vpop.f32.mrb[18].mxu1 }
 0x3f9   : > { %v1228_v15 = vpop.f32.mrb[19].mxu1 }
 0x3fe   : > { %v1538_v41 = vpop.f32.mrb[20].mxu1 }
 0x3ff   : > { %v1547_v37 = vadd.f32 %v1538_v41, %v1224_v40  ;;  %v1540_v38 = vpop.f32.mrb[21].mxu1 }
 0x400   : > { %v1548_v52 = vadd.f32 %v1540_v38, %v1226_v63  ;;  %v1542_v47 = vpop.f32.mrb[22].mxu1  ;;  %v3509_v63 = vpop.permute.xlu0 %3508 }
 0x401   : > { %v1543_v54 = vpop.f32.mrb[23].mxu1 }
 0x406   : > { %v1890_v9 = vpop.f32.mrb[24].mxu1 }
 0x407   : > { %v1899_v12 = vadd.f32 %v1890_v9, %v1547_v37  ;;  %v1892_v53 = vpop.f32.mrb[25].mxu1 }
 0x408   : > { %v1900_v28 = vadd.f32 %v1892_v53, %v1548_v52  ;;  %v1894_v17 = vpop.f32.mrb[26].mxu1 }
 0x409   : > { %v1895_v45 = vpop.f32.mrb[27].mxu1 }
 0x41a   : > { %v2168_v58 = vpop.f32.mrb[28].mxu0 }
 0x41b   : > { %v2216_v10 = vadd.f32 %v2168_v58, %v1897_v6  ;;  %v2170_v56 = vpop.f32.mrb[29].mxu0 }
 0x41c   : > { %v2217_v13 = vadd.f32 %v2170_v56, %v1898_v50  ;;  %v2172_v57 = vpop.f32.mrb[30].mxu0 }
 0x41d   : > { %v2173_v27 = vpop.f32.mrb[31].mxu0 }
 0x426   : > { %v2487_v0 = vpop.f32.mrb[32].mxu0 }
 0x427   : > { %v2535_v8 = vadd.f32 %v2487_v0, %v2216_v10  ;;  %v2489_v5 = vpop.f32.mrb[33].mxu0 }
 0x428   : > { %v2536_v18 = vadd.f32 %v2489_v5, %v2217_v13  ;;  %v2491_v33 = vpop.f32.mrb[34].mxu0 }
 0x429   : > { %v2492_v16 = vpop.f32.mrb[35].mxu0 }
 0x42a   : > { %v2209_v7 = vpop.f32.mrb[28].mxu1 }
 0x42b   : > { %v2218_v25 = vadd.f32 %v2209_v7, %v1899_v12  ;;  %v2211_v59 = vpop.f32.mrb[29].mxu1 }
 0x42c   : > { %v2219_v32 = vadd.f32 %v2211_v59, %v1900_v28  ;;  %v2213_v22 = vpop.f32.mrb[30].mxu1 }
 0x42d   : > { %v2214_v35 = vpop.f32.mrb[31].mxu1 }
 0x42e   : > { %v2815_v34 = vpop.f32.mrb[36].mxu0 }
 0x42f   : > { %v2863_v14 = vadd.f32 %v2815_v34, %v2535_v8  ;;  %v2817_v1 = vpop.f32.mrb[37].mxu0 }
 0x430   : > { %v2864_v49 = vadd.f32 %v2817_v1, %v2536_v18  ;;  %v2819_v24 = vpop.f32.mrb[38].mxu0 }
 0x431   : > { %v2820_v19 = vpop.f32.mrb[39].mxu0 }
 0x432   : > { %v2528_v51 = vpop.f32.mrb[32].mxu1 }
 0x433   : > { %v2537_v36 = vadd.f32 %v2528_v51, %v2218_v25  ;;  %v2530_v62 = vpop.f32.mrb[33].mxu1 }
 0x434   : > { %v2538_v11 = vadd.f32 %v2530_v62, %v2219_v32  ;;  %v2532_v61 = vpop.f32.mrb[34].mxu1 }
 0x435   : > { %v2533_v21 = vpop.f32.mrb[35].mxu1 }
 0x436   : > { %v3134_v46 = vpop.f32.mrb[40].mxu0 }
 0x437   : > { %v3182_v30 = vadd.f32 %v3134_v46, %v2863_v14  ;;  %v3136_v44 = vpop.f32.mrb[41].mxu0 }
 0x438   : > { %v3183_v43 = vadd.f32 %v3136_v44, %v2864_v49  ;;  %v3138_v2 = vpop.f32.mrb[42].mxu0 }
 0x439   : > { %v3139_v26 = vpop.f32.mrb[43].mxu0 }
 0x43a   : > { %v2856_v4 = vpop.f32.mrb[36].mxu1 }
 0x43b   : > { %v2865_v31 = vadd.f32 %v2856_v4, %v2537_v36  ;;  %v2858_v60 = vpop.f32.mrb[37].mxu1 }
 0x43c   : > { %v2866_v6 = vadd.f32 %v2858_v60, %v2538_v11  ;;  %v2860_v23 = vpop.f32.mrb[38].mxu1 }
 0x43d   : > { %v2861_v39 = vpop.f32.mrb[39].mxu1 }
 0x442   : > { %v3175_v50 = vpop.f32.mrb[40].mxu1 }
 0x443   : > { %v3184_v48 = vadd.f32 %v3175_v50, %v2865_v31  ;;  %v3177_v29 = vpop.f32.mrb[41].mxu1 }
 0x444   : > { %v3185_v42 = vadd.f32 %v3177_v29, %v2866_v6  ;;  %v3179_v55 = vpop.f32.mrb[42].mxu1 }
 0x445   : > { %v3180_v40 = vpop.f32.mrb[43].mxu1 }
 0x446   : > { %v3453_v3 = vpop.f32.mrb[44].mxu0 }
 0x447   : > { %v3501_v20 = vadd.f32 %v3453_v3, %v3182_v30  ;;  %v3455_v15 = vpop.f32.mrb[45].mxu0 }
 0x448   : > { %v3502_v41 = vadd.f32 %v3455_v15, %v3183_v43  ;;  %v3457_v37 = vpop.f32.mrb[46].mxu0 }
 0x449   : > { %v3511_v38 = vadd.f32 %v3509_v63, %v3501_v20  ;;  %v3458_v52 = vpop.f32.mrb[47].mxu0 }
 0x44a   : > { %v3512_v47 = vadd.f32 %v3509_v63, %v3502_v41 }
 0x44b   : > { %v3494_v54 = vpop.f32.mrb[44].mxu1  ;;  %v3515_v9 = vmax.f32 %v3511_v38, 0.0 }
 0x44c   : > { %v3503_v12 = vadd.f32 %v3494_v54, %v3184_v48  ;;  %v3496_v53 = vpop.f32.mrb[45].mxu1  ;;  %v3516_v28 = vmax.f32 %v3512_v47, 0.0 }
 0x44d   : > { %v3504_v17 = vadd.f32 %v3496_v53, %v3185_v42  ;;  %v3498_v45 = vpop.f32.mrb[46].mxu1  ;;  %3519 = vst [vmem:[%s246_s16] sm:$0xff] %v3515_v9 }
 0x44e   : > { %v3513_v58 = vadd.f32 %v3509_v63, %v3503_v12  ;;  %v3499_v10 = vpop.f32.mrb[47].mxu1  ;;  %3520 = vst [vmem:[%s246_s16 + $0x8] sm:$0xff] %v3516_v28 }
 0x44f   : > { %v3514_v56 = vadd.f32 %v3509_v63, %v3504_v17 }
 0x450   : > { %v3517_v13 = vmax.f32 %v3513_v58, 0.0 }
 0x451   : > { %v3518_v57 = vmax.f32 %v3514_v56, 0.0 }
 0x452   : > { %3521 = vst [vmem:[%s246_s16 + $0x10] sm:$0xff] %v3517_v13 }
 0x453   : > { %3522 = vst [vmem:[%s246_s16 + $0x18] sm:$0xff] %v3518_v57 }
 0x454   : > { %3854 = shalt.err (!%p3851_p7)
}
 0x455   : > { %s3855_s10 = scalar_lea.hbm %s5364_s27, 512  ;;  %s3859_s16 = scalar_lea.hbm %s5424_s5, 2048 }
 0x456   : > { %p3856_p9 = scmp.ne.s32.totalorder %s5364_s27, %s3855_s10  ;;  %p3860_p12 = scmp.lt.u32.totalorder %s5364_s27, %s5424_s5 }
 0x457   : > { %p3861_p13 = scmp.lt.u32.totalorder %s3859_s16, %s3855_s10  ;;  %p3863_p1 = scmp.lt.u32.totalorder %s3855_s10, %s5364_s27 }
 0x458   : > { %p3857_p10 = pnand %p3856_p9, %p4025_p3 }
 0x459   : > { %p3862_p0 = por %p3861_p13, %p3860_p12 }
 0x45a   : > { %p3858_p11 = pneg %p3857_p10 }
 0x45b   : > { %p3864_p2 = por %p3863_p1, %p3862_p0 }
 0x45d   : > { %p3865_p4 = pnand %p3864_p2, %p3858_p11 }
 0x45f   : > { %3868 = shalt.err (!%p3865_p4)
}
 0x460   : > { %3756 = dma.vmem_to_hbm [thread:$0]  (%p4025_p3), %s5366_s22, 512, %s5364_s27, %s3524_s30  }
 0x461 PF: > { %p3762_p5 = scmp.ge.s32.totalorder %s3935_s25, 2  ;;  %s3552_s26 = sand.u32 1, %s3907_s18  }
 0x462   : > { %s3553_s8 = scalar_lea.sflag [#allocation3], %s3552_s26 }
 0x463   : > { %p3759_p6 = pnand %p3762_p5, %p4034_p8 }
 0x465   : > { %3902 = dma.done.wait (!%p3759_p6), %s3553_s8, 512  }
 0x466   : > { %3904 = vsyncadd (!%p3759_p6), %s3553_s8, 4294966784  ;;  %s18_s25 = sadd.s32 1, %s3935_s25   ;;  %s5462_s18 = smov %s3911_s19 }
 0x467   : > { %p15_p7 = scmp.ge.s32.totalorder %s18_s25, 6   ;;  %s5463_s19 = smov %s3915_s20 }
 0x468   : > { %s5464_s20 = smov %s4043_s11  ;;  %s5465_s21 = smov %s3927_s23 }
 0x469   : > { %s5466_s22 = smov %s3931_s24  ;;  %s5467_s23 = smov %s5470_s28 }
 0x46a   : > { %s5468_s24 = smov %s5474_s29  ;;  %17 = sbr.rel (!%p15_p7) target bundleno = 5 (0x5), region = 86 }
 0x471   :  { %3558 = vsyncpa [#allocation3], 1 }
 0x472   :  { %3560 = vsyncpa [#allocation3 + $0x1], 1 }

</bundles_post_ra>
